<compile_context>
chip_gen: v7x
topology: tpu7x:2x2x1
jax: 0.10.0
libtpu: 0.0.40
codegen_flags: <defaults>
</compile_context>

<pallas_src>
import functools

import jax
import jax.numpy as jnp
from jax.experimental import pallas as pl
from jax.experimental.pallas import tpu as pltpu


def conv_transition_kernel(xlo_ref, xmid_ref, xhi_ref, scale_ref, shift_ref,
                           w_ref, b_ref, masks_ref, o_ref, *, H, W, td):
    HW = H * W
    X = td * HW
    j = pl.program_id(1)
    last = pl.num_programs(1) - 1

    scale = scale_ref[...]                      # (Cin, 1)
    shift = shift_ref[...]                      # (Cin, 1)

    def bn_relu(v):                             # v: (Cin, *)
        return jnp.maximum(v * scale + shift, 0.0)

    # BN + ReLU.  Depth zero-padding of the conv input is reproduced by masking only the
    # tiny (Cin, HW) halo slices at the D boundaries (not full-size activations).
    ac = bn_relu(xmid_ref[...])                                   # depths [d0, d0+td)
    lo = bn_relu(xlo_ref[...]) * jnp.where(j > 0, 1.0, 0.0)       # depth d0-1
    hi = bn_relu(xhi_ref[...]) * jnp.where(j < last, 1.0, 0.0)    # depth d0+td

    # Shifted activation slabs for the (3,1,1) depth conv (lane-aligned concats: offsets
    # are multiples of HW, itself a multiple of 128).
    if td > 1:
        a_prev = jnp.concatenate([lo, ac[:, :X - HW]], axis=1)    # depths [d0-1, d0+td-1)
        a_next = jnp.concatenate([ac[:, HW:], hi], axis=1)        # depths [d0+1, d0+td]
    else:
        a_prev, a_next = lo, hi

    # Conv3d(kernel=(3,1,1)) + bias.  The 1/9 avg-pool divisor is already folded into w/b.
    y = (jnp.dot(w_ref[0], a_prev, preferred_element_type=jnp.float32)
         + jnp.dot(w_ref[1], ac, preferred_element_type=jnp.float32)
         + jnp.dot(w_ref[2], a_next, preferred_element_type=jnp.float32)
         + b_ref[...])                                            # (Cout, td*HW)

    # AvgPool3d (1,3,3), stride 1, pad (0,1,1), count_include_pad=True: separable 3-tap
    # stencils along W then H on the flat h*W + w lane axis.  Precomputed masks reproduce
    # the zero padding and kill roll wrap-around across row / depth boundaries.
    left_ok = masks_ref[0:1, :]                 # neighbor at w-1 exists
    right_ok = masks_ref[1:2, :]                # neighbor at w+1 exists
    up_ok = masks_ref[2:3, :]                   # neighbor at h-1 exists
    down_ok = masks_ref[3:4, :]                 # neighbor at h+1 exists

    t = y + jnp.roll(y, 1, axis=1) * left_ok + jnp.roll(y, -1, axis=1) * right_ok
    out = t + jnp.roll(t, W, axis=1) * up_ok + jnp.roll(t, -W, axis=1) * down_ok
    o_ref[...] = out.astype(o_ref.dtype)


def _pick_td(D, target=8):
    """Largest divisor of D that is <= target (depths processed per grid step)."""
    td = 1
    for t in range(1, min(D, target) + 1):
        if D % t == 0:
            td = t
    return td


def conv_transition(x, gamma, beta, running_mean, running_var, conv_w, conv_b,
                    eps=1e-5, td=None):
    """x: (N, Cin, D, H, W) float32 (PyTorch NCDHW for 3D)."""
    N, Cin, D, H, W = x.shape
    Cout = conv_w.shape[0]
    HW = H * W
    assert HW % 128 == 0, "H*W must be a multiple of 128 for lane-dense tiling"
    if td is None:
        td = _pick_td(D)
    assert D % td == 0, (D, td)
    n_chunks = D // td
    X = td * HW

    # Fold inference-mode BatchNorm into per-channel scale/shift.
    inv_std = gamma / jnp.sqrt(running_var + eps)
    scale = inv_std.reshape(Cin, 1).astype(jnp.float32)
    shift = (beta - running_mean * inv_std).reshape(Cin, 1).astype(jnp.float32)

    # Conv weight (Cout, Cin, 3, 1, 1) -> (3, Cout, Cin); index k matches depth offset k-1.
    # Fold the 1/9 average-pool divisor into weights and bias (the pool is linear).
    w = (jnp.transpose(conv_w[:, :, :, 0, 0], (2, 0, 1)) * (1.0 / 9.0)).astype(jnp.float32)
    b = (conv_b.reshape(Cout, 1) * (1.0 / 9.0)).astype(jnp.float32)

    # Spatial-boundary validity masks for the separable 3x3 pool, precomputed on the host
    # side and tiled over the td depths of one chunk: shape (4, td*HW).
    wgrid = jnp.broadcast_to(jnp.arange(W)[None, :], (H, W))
    hgrid = jnp.broadcast_to(jnp.arange(H)[:, None], (H, W))
    masks = jnp.stack([wgrid > 0, wgrid < W - 1, hgrid > 0, hgrid < H - 1], axis=0)
    masks = jnp.tile(masks.reshape(4, HW).astype(jnp.float32), (1, td))     # (4, X)

    # Free collapse of (D, H, W) -> D*H*W; no transpose, no extra HBM copy.
    xf = x.reshape(N, Cin, D * HW).astype(jnp.float32)

    kernel = functools.partial(conv_transition_kernel, H=H, W=W, td=td)

    out = pl.pallas_call(
        kernel,
        out_shape=jax.ShapeDtypeStruct((N, Cout, D * HW), jnp.float32),
        grid_spec=pltpu.PrefetchScalarGridSpec(
            num_scalar_prefetch=0,
            grid=(N, n_chunks),
            in_specs=[
                # left halo: single depth slice d0-1 (clamped; masked in-kernel at j==0)
                pl.BlockSpec((None, Cin, HW),
                             lambda n, j: (n, 0, jnp.maximum(j * td - 1, 0))),
                # main chunk: depths [j*td, (j+1)*td), lane-dense (Cin, td*HW)
                pl.BlockSpec((None, Cin, X), lambda n, j: (n, 0, j)),
                # right halo: single depth slice d0+td (clamped; masked at last chunk)
                pl.BlockSpec((None, Cin, HW),
                             lambda n, j: (n, 0, jnp.minimum(j * td + td, D - 1))),
                pl.BlockSpec((Cin, 1), lambda n, j: (0, 0)),           # bn scale
                pl.BlockSpec((Cin, 1), lambda n, j: (0, 0)),           # bn shift
                pl.BlockSpec((3, Cout, Cin), lambda n, j: (0, 0, 0)),  # conv weight (/9)
                pl.BlockSpec((Cout, 1), lambda n, j: (0, 0)),          # conv bias (/9)
                pl.BlockSpec((4, X), lambda n, j: (0, 0)),             # pool boundary masks
            ],
            out_specs=pl.BlockSpec((None, Cout, X), lambda n, j: (n, 0, j)),
        ),
        compiler_params=pltpu.CompilerParams(
            dimension_semantics=("parallel", "parallel")),
    )(xf, xf, xf, scale, shift, w, b, masks)

    return out.reshape(N, Cout, D, H, W)


def conv_transition_reference(x, gamma, beta, mean, var, conv_w, conv_b, eps=1e-5):
    """Pure-JAX reference with identical semantics (for verification)."""
    N, Cin, D, H, W = x.shape
    Cout = conv_w.shape[0]
    brd = lambda v: v[None, :, None, None, None]
    xb = (x - brd(mean)) / jnp.sqrt(brd(var) + eps) * brd(gamma) + brd(beta)
    xb = jnp.maximum(xb, 0.0)
    xp = jnp.pad(xb, ((0, 0), (0, 0), (1, 1), (0, 0), (0, 0)))
    y = jnp.zeros((N, Cout, D, H, W), jnp.float32)
    for k in range(3):
        y = y + jnp.einsum('oc,ncdhw->nodhw', conv_w[:, :, k, 0, 0], xp[:, :, k:k + D])
    y = y + brd(conv_b)
    yp = jnp.pad(y, ((0, 0), (0, 0), (0, 0), (1, 1), (1, 1)))
    out = jnp.zeros_like(y)
    for i in range(3):
        for j in range(3):
            out = out + yp[:, :, :, i:i + H, j:j + W]
    return out / 9.0


if __name__ == "__main__":
    N, Cin, Cout, D, H, W = 2, 4, 8, 16, 16, 16   # td=8 -> grid (2, 2): exercises both
                                                  # boundary-masked and HBM-halo paths.
    key = jax.random.PRNGKey(0)
    k_x, k_g, k_b, k_m, k_v, k_w, k_cb = jax.random.split(key, 7)

    x = jax.random.normal(k_x, (N, Cin, D, H, W), jnp.float32)
    gamma = jax.random.uniform(k_g, (Cin,), jnp.float32, 0.5, 1.5)
    beta = jax.random.normal(k_b, (Cin,), jnp.float32) * 0.1
    running_mean = jax.random.normal(k_m, (Cin,), jnp.float32) * 0.1
    running_var = jax.random.uniform(k_v, (Cin,), jnp.float32, 0.5, 1.5)
    conv_w = jax.random.normal(k_w, (Cout, Cin, 3, 1, 1), jnp.float32) * 0.1
    conv_b = jax.random.normal(k_cb, (Cout,), jnp.float32) * 0.1

    out = conv_transition(x, gamma, beta, running_mean, running_var, conv_w, conv_b)
    out = jax.block_until_ready(out)

    ref = conv_transition_reference(x, gamma, beta, running_mean, running_var,
                                    conv_w, conv_b)
    assert out.shape == (N, Cout, D, H, W), out.shape
    err = float(jnp.max(jnp.abs(out - ref)))
    assert jnp.allclose(out, ref, atol=1e-4, rtol=1e-4), err

    print("KERNEL_OK")
</pallas_src>

<mosaic_0001>
module attributes {stable_mosaic.version = 11 : i64} {
  func.func @conv_transition_kernel(%arg0: i32, %arg1: i32, %arg2: memref<1x4x256xf32, #tpu.memory_space<vmem>>, %arg3: memref<1x4x2048xf32, #tpu.memory_space<vmem>>, %arg4: memref<1x4x256xf32, #tpu.memory_space<vmem>>, %arg5: memref<4x1xf32, #tpu.memory_space<vmem>>, %arg6: memref<4x1xf32, #tpu.memory_space<vmem>>, %arg7: memref<3x8x4xf32, #tpu.memory_space<vmem>>, %arg8: memref<8x1xf32, #tpu.memory_space<vmem>>, %arg9: memref<4x2048xf32, #tpu.memory_space<vmem>>, %arg10: memref<1x8x2048xf32, #tpu.memory_space<vmem>>) attributes {dimension_semantics = [#tpu.dimension_semantics<parallel>, #tpu.dimension_semantics<parallel>], iteration_bounds = array<i64: 2, 2>, scalar_prefetch = 0 : i64, scratch_operands = 0 : i64, tpu.core_type = #tpu.core_type<tc>, window_params = [{transform_indices = @transform_0, window_bounds = array<i64: 1, 4, 256>}, {transform_indices = @transform_1, window_bounds = array<i64: 1, 4, 2048>}, {transform_indices = @transform_2, window_bounds = array<i64: 1, 4, 256>}, {pipeline_mode = #tpu.pipeline_mode<synchronous>, transform_indices = @transform_3, window_bounds = array<i64: 4, 1>}, {pipeline_mode = #tpu.pipeline_mode<synchronous>, transform_indices = @transform_4, window_bounds = array<i64: 4, 1>}, {pipeline_mode = #tpu.pipeline_mode<synchronous>, transform_indices = @transform_5, window_bounds = array<i64: 3, 8, 4>}, {pipeline_mode = #tpu.pipeline_mode<synchronous>, transform_indices = @transform_6, window_bounds = array<i64: 8, 1>}, {pipeline_mode = #tpu.pipeline_mode<synchronous>, transform_indices = @transform_7, window_bounds = array<i64: 4, 2048>}, {transform_indices = @transform_8, window_bounds = array<i64: 1, 8, 2048>}]} {
    %c0 = arith.constant 0 : index
    %c0_0 = arith.constant 0 : index
    %0 = vector.load %arg5[%c0, %c0_0] : memref<4x1xf32, #tpu.memory_space<vmem>>, vector<4x1xf32>
    %c0_1 = arith.constant 0 : index
    %c0_2 = arith.constant 0 : index
    %1 = vector.load %arg6[%c0_1, %c0_2] : memref<4x1xf32, #tpu.memory_space<vmem>>, vector<4x1xf32>
    %c0_3 = arith.constant 0 : index
    %c0_4 = arith.constant 0 : index
    %c0_5 = arith.constant 0 : index
    %2 = vector.load %arg3[%c0_3, %c0_4, %c0_5] : memref<1x4x2048xf32, #tpu.memory_space<vmem>>, vector<1x4x2048xf32>
    %3 = vector.shape_cast %2 : vector<1x4x2048xf32> to vector<4x2048xf32>
    %4 = vector.broadcast %0 : vector<4x1xf32> to vector<4x2048xf32>
    %5 = arith.mulf %3, %4 : vector<4x2048xf32>
    %6 = vector.broadcast %1 : vector<4x1xf32> to vector<4x2048xf32>
    %7 = arith.addf %5, %6 : vector<4x2048xf32>
    %cst = arith.constant 0.000000e+00 : f32
    %8 = vector.broadcast %cst : f32 to vector<4x2048xf32>
    %9 = arith.maximumf %7, %8 : vector<4x2048xf32>
    %c0_6 = arith.constant 0 : index
    %c0_7 = arith.constant 0 : index
    %c0_8 = arith.constant 0 : index
    %10 = vector.load %arg2[%c0_6, %c0_7, %c0_8] : memref<1x4x256xf32, #tpu.memory_space<vmem>>, vector<1x4x256xf32>
    %11 = vector.shape_cast %10 : vector<1x4x256xf32> to vector<4x256xf32>
    %12 = vector.broadcast %0 : vector<4x1xf32> to vector<4x256xf32>
    %13 = arith.mulf %11, %12 : vector<4x256xf32>
    %14 = vector.broadcast %1 : vector<4x1xf32> to vector<4x256xf32>
    %15 = arith.addf %13, %14 : vector<4x256xf32>
    %cst_9 = arith.constant 0.000000e+00 : f32
    %16 = vector.broadcast %cst_9 : f32 to vector<4x256xf32>
    %17 = arith.maximumf %15, %16 : vector<4x256xf32>
    %c0_i32 = arith.constant 0 : i32
    %18 = arith.cmpi sgt, %arg1, %c0_i32 : i32
    %cst_10 = arith.constant 1.000000e+00 : f32
    %cst_11 = arith.constant 0.000000e+00 : f32
    %19 = arith.select %18, %cst_10, %cst_11 : f32
    %20 = vector.broadcast %19 : f32 to vector<4x256xf32>
    %21 = arith.mulf %17, %20 : vector<4x256xf32>
    %c0_12 = arith.constant 0 : index
    %c0_13 = arith.constant 0 : index
    %c0_14 = arith.constant 0 : index
    %22 = vector.load %arg4[%c0_12, %c0_13, %c0_14] : memref<1x4x256xf32, #tpu.memory_space<vmem>>, vector<1x4x256xf32>
    %23 = vector.shape_cast %22 : vector<1x4x256xf32> to vector<4x256xf32>
    %24 = vector.broadcast %0 : vector<4x1xf32> to vector<4x256xf32>
    %25 = arith.mulf %23, %24 : vector<4x256xf32>
    %26 = vector.broadcast %1 : vector<4x1xf32> to vector<4x256xf32>
    %27 = arith.addf %25, %26 : vector<4x256xf32>
    %cst_15 = arith.constant 0.000000e+00 : f32
    %28 = vector.broadcast %cst_15 : f32 to vector<4x256xf32>
    %29 = arith.maximumf %27, %28 : vector<4x256xf32>
    %c1_i32 = arith.constant 1 : i32
    %30 = arith.cmpi slt, %arg1, %c1_i32 : i32
    %cst_16 = arith.constant 1.000000e+00 : f32
    %cst_17 = arith.constant 0.000000e+00 : f32
    %31 = arith.select %30, %cst_16, %cst_17 : f32
    %32 = vector.broadcast %31 : f32 to vector<4x256xf32>
    %33 = arith.mulf %29, %32 : vector<4x256xf32>
    %34 = vector.extract_strided_slice %9 {offsets = [0, 0], sizes = [4, 1792], strides = [1, 1]} : vector<4x2048xf32> to vector<4x1792xf32>
    %35 = tpu.concatenate %21, %34 in 1 : vector<4x256xf32>, vector<4x1792xf32> -> vector<4x2048xf32>
    %36 = vector.extract_strided_slice %9 {offsets = [0, 256], sizes = [4, 1792], strides = [1, 1]} : vector<4x2048xf32> to vector<4x1792xf32>
    %37 = tpu.concatenate %36, %33 in 1 : vector<4x1792xf32>, vector<4x256xf32> -> vector<4x2048xf32>
    %c0_18 = arith.constant 0 : index
    %c0_19 = arith.constant 0 : index
    %c0_20 = arith.constant 0 : index
    %38 = vector.load %arg7[%c0_18, %c0_19, %c0_20] : memref<3x8x4xf32, #tpu.memory_space<vmem>>, vector<1x8x4xf32>
    %39 = vector.shape_cast %38 : vector<1x8x4xf32> to vector<8x4xf32>
    %cst_21 = arith.constant dense<0.000000e+00> : vector<8x2048xf32>
    %40 = tpu.matmul %39, %35, %cst_21 {dimension_numbers = #tpu.dot_dimension_numbers<[1], [0], [0], [1], [0, 0, 1, 1], [], []>} : vector<8x4xf32>, vector<4x2048xf32>, vector<8x2048xf32> -> vector<8x2048xf32>
    %c1 = arith.constant 1 : index
    %c0_22 = arith.constant 0 : index
    %c0_23 = arith.constant 0 : index
    %41 = vector.load %arg7[%c1, %c0_22, %c0_23] : memref<3x8x4xf32, #tpu.memory_space<vmem>>, vector<1x8x4xf32>
    %42 = vector.shape_cast %41 : vector<1x8x4xf32> to vector<8x4xf32>
    %cst_24 = arith.constant dense<0.000000e+00> : vector<8x2048xf32>
    %43 = tpu.matmul %42, %9, %cst_24 {dimension_numbers = #tpu.dot_dimension_numbers<[1], [0], [0], [1], [0, 0, 1, 1], [], []>} : vector<8x4xf32>, vector<4x2048xf32>, vector<8x2048xf32> -> vector<8x2048xf32>
    %44 = arith.addf %40, %43 : vector<8x2048xf32>
    %c2 = arith.constant 2 : index
    %c0_25 = arith.constant 0 : index
    %c0_26 = arith.constant 0 : index
    %45 = vector.load %arg7[%c2, %c0_25, %c0_26] : memref<3x8x4xf32, #tpu.memory_space<vmem>>, vector<1x8x4xf32>
    %46 = vector.shape_cast %45 : vector<1x8x4xf32> to vector<8x4xf32>
    %cst_27 = arith.constant dense<0.000000e+00> : vector<8x2048xf32>
    %47 = tpu.matmul %46, %37, %cst_27 {dimension_numbers = #tpu.dot_dimension_numbers<[1], [0], [0], [1], [0, 0, 1, 1], [], []>} : vector<8x4xf32>, vector<4x2048xf32>, vector<8x2048xf32> -> vector<8x2048xf32>
    %48 = arith.addf %44, %47 : vector<8x2048xf32>
    %c0_28 = arith.constant 0 : index
    %c0_29 = arith.constant 0 : index
    %49 = vector.load %arg8[%c0_28, %c0_29] : memref<8x1xf32, #tpu.memory_space<vmem>>, vector<8x1xf32>
    %50 = vector.broadcast %49 : vector<8x1xf32> to vector<8x2048xf32>
    %51 = arith.addf %48, %50 : vector<8x2048xf32>
    %c0_30 = arith.constant 0 : index
    %c0_31 = arith.constant 0 : index
    %52 = vector.load %arg9[%c0_30, %c0_31] : memref<4x2048xf32, #tpu.memory_space<vmem>>, vector<1x2048xf32>
    %c1_32 = arith.constant 1 : index
    %c0_33 = arith.constant 0 : index
    %53 = vector.load %arg9[%c1_32, %c0_33] : memref<4x2048xf32, #tpu.memory_space<vmem>>, vector<1x2048xf32>
    %c2_34 = arith.constant 2 : index
    %c0_35 = arith.constant 0 : index
    %54 = vector.load %arg9[%c2_34, %c0_35] : memref<4x2048xf32, #tpu.memory_space<vmem>>, vector<1x2048xf32>
    %c3 = arith.constant 3 : index
    %c0_36 = arith.constant 0 : index
    %55 = vector.load %arg9[%c3, %c0_36] : memref<4x2048xf32, #tpu.memory_space<vmem>>, vector<1x2048xf32>
    %56 = vector.extract_strided_slice %51 {offsets = [0, 2047], sizes = [8, 1], strides = [1, 1]} : vector<8x2048xf32> to vector<8x1xf32>
    %57 = vector.extract_strided_slice %51 {offsets = [0, 0], sizes = [8, 2047], strides = [1, 1]} : vector<8x2048xf32> to vector<8x2047xf32>
    %58 = tpu.concatenate %56, %57 in 1 : vector<8x1xf32>, vector<8x2047xf32> -> vector<8x2048xf32>
    %59 = vector.broadcast %52 : vector<1x2048xf32> to vector<8x2048xf32>
    %60 = arith.mulf %58, %59 : vector<8x2048xf32>
    %61 = arith.addf %51, %60 : vector<8x2048xf32>
    %62 = vector.extract_strided_slice %51 {offsets = [0, 1], sizes = [8, 2047], strides = [1, 1]} : vector<8x2048xf32> to vector<8x2047xf32>
    %63 = vector.extract_strided_slice %51 {offsets = [0, 0], sizes = [8, 1], strides = [1, 1]} : vector<8x2048xf32> to vector<8x1xf32>
    %64 = tpu.concatenate %62, %63 in 1 : vector<8x2047xf32>, vector<8x1xf32> -> vector<8x2048xf32>
    %65 = vector.broadcast %53 : vector<1x2048xf32> to vector<8x2048xf32>
    %66 = arith.mulf %64, %65 : vector<8x2048xf32>
    %67 = arith.addf %61, %66 : vector<8x2048xf32>
    %68 = vector.extract_strided_slice %67 {offsets = [0, 2032], sizes = [8, 16], strides = [1, 1]} : vector<8x2048xf32> to vector<8x16xf32>
    %69 = vector.extract_strided_slice %67 {offsets = [0, 0], sizes = [8, 2032], strides = [1, 1]} : vector<8x2048xf32> to vector<8x2032xf32>
    %70 = tpu.concatenate %68, %69 in 1 : vector<8x16xf32>, vector<8x2032xf32> -> vector<8x2048xf32>
    %71 = vector.broadcast %54 : vector<1x2048xf32> to vector<8x2048xf32>
    %72 = arith.mulf %70, %71 : vector<8x2048xf32>
    %73 = arith.addf %67, %72 : vector<8x2048xf32>
    %74 = vector.extract_strided_slice %67 {offsets = [0, 16], sizes = [8, 2032], strides = [1, 1]} : vector<8x2048xf32> to vector<8x2032xf32>
    %75 = vector.extract_strided_slice %67 {offsets = [0, 0], sizes = [8, 16], strides = [1, 1]} : vector<8x2048xf32> to vector<8x16xf32>
    %76 = tpu.concatenate %74, %75 in 1 : vector<8x2032xf32>, vector<8x16xf32> -> vector<8x2048xf32>
    %77 = vector.broadcast %55 : vector<1x2048xf32> to vector<8x2048xf32>
    %78 = arith.mulf %76, %77 : vector<8x2048xf32>
    %79 = arith.addf %73, %78 : vector<8x2048xf32>
    %c0_37 = arith.constant 0 : index
    %c0_38 = arith.constant 0 : index
    %c0_39 = arith.constant 0 : index
    %80 = vector.load %arg10[%c0_37, %c0_38, %c0_39] : memref<1x8x2048xf32, #tpu.memory_space<vmem>>, vector<1x8x2048xf32>
    %81 = vector.shape_cast %80 : vector<1x8x2048xf32> to vector<8x2048xf32>
    %82 = vector.shape_cast %79 : vector<8x2048xf32> to vector<1x8x2048xf32>
    tpu.vector_store %arg10[%c0_37, %c0_38, %c0_39], %82 {strides = array<i32>} : memref<1x8x2048xf32, #tpu.memory_space<vmem>>, vector<1x8x2048xf32>,
    return
  }
  func.func @transform_0(%arg0: i32, %arg1: i32) -> (i32, i32, i32) {
    %c8_i32 = arith.constant 8 : i32
    %0 = arith.muli %arg1, %c8_i32 : i32
    %c1_i32 = arith.constant 1 : i32
    %1 = arith.subi %0, %c1_i32 : i32
    %c0_i32 = arith.constant 0 : i32
    %2 = arith.maxsi %1, %c0_i32 : i32
    %c0_i32_0 = arith.constant 0 : i32
    %c0_i32_1 = arith.constant 0 : i32
    return %arg0, %c0_i32_0, %2 : i32, i32, i32
  }
  func.func @transform_1(%arg0: i32, %arg1: i32) -> (i32, i32, i32) {
    %c0_i32 = arith.constant 0 : i32
    %c0_i32_0 = arith.constant 0 : i32
    return %arg0, %c0_i32, %arg1 : i32, i32, i32
  }
  func.func @transform_2(%arg0: i32, %arg1: i32) -> (i32, i32, i32) {
    %c8_i32 = arith.constant 8 : i32
    %0 = arith.muli %arg1, %c8_i32 : i32
    %c8_i32_0 = arith.constant 8 : i32
    %1 = arith.addi %0, %c8_i32_0 : i32
    %c15_i32 = arith.constant 15 : i32
    %2 = arith.minsi %1, %c15_i32 : i32
    %c0_i32 = arith.constant 0 : i32
    %c0_i32_1 = arith.constant 0 : i32
    return %arg0, %c0_i32, %2 : i32, i32, i32
  }
  func.func @transform_3(%arg0: i32, %arg1: i32) -> (i32, i32) {
    %c0_i32 = arith.constant 0 : i32
    %c0_i32_0 = arith.constant 0 : i32
    %c0_i32_1 = arith.constant 0 : i32
    return %c0_i32, %c0_i32_0 : i32, i32
  }
  func.func @transform_4(%arg0: i32, %arg1: i32) -> (i32, i32) {
    %c0_i32 = arith.constant 0 : i32
    %c0_i32_0 = arith.constant 0 : i32
    %c0_i32_1 = arith.constant 0 : i32
    return %c0_i32, %c0_i32_0 : i32, i32
  }
  func.func @transform_5(%arg0: i32, %arg1: i32) -> (i32, i32, i32) {
    %c0_i32 = arith.constant 0 : i32
    %c0_i32_0 = arith.constant 0 : i32
    %c0_i32_1 = arith.constant 0 : i32
    %c0_i32_2 = arith.constant 0 : i32
    return %c0_i32, %c0_i32_0, %c0_i32_1 : i32, i32, i32
  }
  func.func @transform_6(%arg0: i32, %arg1: i32) -> (i32, i32) {
    %c0_i32 = arith.constant 0 : i32
    %c0_i32_0 = arith.constant 0 : i32
    %c0_i32_1 = arith.constant 0 : i32
    return %c0_i32, %c0_i32_0 : i32, i32
  }
  func.func @transform_7(%arg0: i32, %arg1: i32) -> (i32, i32) {
    %c0_i32 = arith.constant 0 : i32
    %c0_i32_0 = arith.constant 0 : i32
    %c0_i32_1 = arith.constant 0 : i32
    return %c0_i32, %c0_i32_0 : i32, i32
  }
  func.func @transform_8(%arg0: i32, %arg1: i32) -> (i32, i32, i32) {
    %c0_i32 = arith.constant 0 : i32
    %c0_i32_0 = arith.constant 0 : i32
    return %arg0, %c0_i32, %arg1 : i32, i32, i32
  }
}

</mosaic_0001>

<bundles_post_ra>
// kernel: tpu_custom_call.1
= control target key start
LH: loop header
LB: loop body
LE: loop exit
PB: predicated region body
PF: predicated region fallthrough
CT: control target
= control target key end

     0   :  { %s5092_s0 = inlined_call_operand.hbm [shape: f32[2,4,4096], index: 0, kind: input, shape index: {}]   ;;  %s5093_s1 = inlined_call_operand.hbm [shape: f32[2,4,4096], index: 1, kind: input, shape index: {}]   ;;  %s5094_s2 = inlined_call_operand.hbm [shape: f32[2,4,4096], index: 2, kind: input, shape index: {}]   ;;  %s5095_s3 = inlined_call_operand.vmem [shape: f32[4,1], index: 3, kind: input, shape index: {}]   ;;  %s5096_s4 = inlined_call_operand.vmem [shape: f32[4,1], index: 4, kind: input, shape index: {}]   ;;  %s5097_s5 = inlined_call_operand.vmem [shape: f32[3,8,4], index: 5, kind: input, shape index: {}]   ;;  %s5098_s6 = inlined_call_operand.vmem [shape: f32[8,1], index: 6, kind: input, shape index: {}]   ;;  %s5099_s7 = inlined_call_operand.vmem [shape: f32[4,2048], index: 7, kind: input, shape index: {}]   ;;  %s5100_s8 = inlined_call_operand.hbm [shape: f32[2,8,4096], index: 8, kind: output, shape index: {}]  }
   0x1   :  { %5127 = sst [smem:[#allocation27_spill]] %s5093_s1 }
   0x2   :  { %5128 = sst [smem:[#allocation28_spill]] %s5095_s3 }
   0x3   :  { %5129 = sst [smem:[#allocation29_spill]] %s5096_s4 }
   0x4   :  { %5130 = sst [smem:[#allocation30_spill]] %s5097_s5 }
   0x5   :  { %5131 = sst [smem:[#allocation31_spill]] %s5098_s6 }
   0x6   :  { %5132 = sst [smem:[#allocation32_spill]] %s5099_s7 }
   0x7   :  { %5133 = sst [smem:[#allocation33_spill]] %s5100_s8 }
   0x8   :  { %13 = vsyncpa [#allocation3], 0 }
   0x9   :  { %15 = vsyncpa [#allocation3 + $0x1], 0 }
   0xa   :  { %16 = vsyncpa [#allocation6], 0 }
   0xb   :  { %18 = vsyncpa [#allocation6 + $0x1], 0 }
   0xc   :  { %19 = vsyncpa [#allocation4], 0 }
   0xd   :  { %21 = vsyncpa [#allocation4 + $0x1], 0  ;;  %s3881_s27 = smov 0   ;;  %s3883_s28 = smov 0  }
   0xe   :  { %s3885_s29 = smov 0   ;;  %s3887_s30 = smov 0  }
   0xf   :  { %s3889_s9 = smov 0   ;;  %s3891_s10 = smov 0  }
  0x10   :  { %s3893_s11 = smov 0   ;;  %s3895_s12 = smov 0  }
  0x11   :  { %s3897_s13 = smov 0   ;;  %s3899_s14 = smov 0  }
  0x12   :  { %s3901_s15 = smov 0   ;;  %s3903_s16 = smov 0  }
  0x13   :  { %s3905_s17 = smov 0   ;;  %s3907_s18 = smov 0  }
  0x14 LB: > { %5134 = sst [smem:[#allocation13_spill]] %s3783_s30  ;;  %s3952_s19 = sadd.s32 4294967295, %s3823_s18   ;;  %s3823_s18 = sphi %s3907_s18, %s27_s18   ;;  %s3819_s17 = sphi %s3905_s17, %s5201_s17   ;;  %s3815_s16 = sphi %s3903_s16, %s5200_s16   ;;  %s3811_s15 = sphi %s3901_s15, %s5199_s15   ;;  %s3807_s14 = sphi %s3899_s14, %s5198_s14   ;;  %s3803_s13 = sphi %s3897_s13, %s5210_s13   ;;  %s3799_s12 = sphi %s3895_s12, %s5209_s12   ;;  %s3795_s11 = sphi %s3893_s11, %s5208_s11   ;;  %s3791_s10 = sphi %s3891_s10, %s5207_s10   ;;  %s3787_s9 = sphi %s3889_s9, %s5206_s9   ;;  %s3783_s30 = sphi %s3887_s30, %s5195_s30   ;;  %s3779_s29 = sphi %s3885_s29, %s5205_s29   ;;  %s3775_s28 = sphi %s3883_s28, %s5204_s28   ;;  %s3771_s27 = sphi %s3881_s27, %s5203_s27  }
  0x15   : > { %5135 = sst [smem:[#allocation14_spill]] %s3787_s9  ;;  %s3286_s20 = sadd.s32 4294967294, %s3823_s18  }
  0x16   : > { %5136 = sst [smem:[#allocation15_spill]] %s3799_s12  ;;  %s36_s21 = sadd.s32 1, %s3815_s16 }
  0x17   : > { %5137 = sst [smem:[#allocation16_spill]] %s3807_s14  ;;  %s39_s22 = sadd.s32 1, %s3819_s17 }
  0x18   : > { %5138 = sst [smem:[#allocation17_spill]] %s3811_s15  ;;  %p37_p0 = scmp.ge.s32.totalorder %s36_s21, 2 }
  0x19   : > { %5139 = sst [smem:[#allocation18_spill]] %s3815_s16  ;;  %p5112_p1 = scmp.eq.s32.totalorder %s3823_s18, 0 }
  0x1a   : > { %5140 = sst [smem:[#allocation19_spill]] %s3819_s17  ;;  %p5111_p2 = scmp.eq.s32.totalorder %s3952_s19, 0 }
  0x1b   : > { %s5212_s21 = smov (%p37_p0, %s36_s21), 0  ;;  %s5214_s22 = smov (!%p37_p0, %s39_s22), %s3819_s17 }
  0x1c   : > { %5141 = sst [smem:[#allocation20_spill]] %s5212_s21  ;;  %p91_p3 = scmp.ne.s32.totalorder %s3791_s10, %s3787_s9 }
  0x1d   : > { %p97_p4 = scmp.ne.s32.totalorder %s3787_s9, %s3783_s30  ;;  %p264_p5 = scmp.eq.s32.totalorder %s3952_s19, 3 }
  0x1e   : > { %p3974_p6 = por %p91_p3, %p5112_p1  ;;  %p270_p7 = scmp.eq.s32.totalorder %s3286_s20, 3 }
  0x1f   : > { %p3980_p8 = por %p97_p4, %p5111_p2  ;;  %p3984_p9 = por %p264_p5, %p91_p3 }
  0x20   : > { %p3988_p10 = por %p270_p7, %p97_p4  ;;  %p5110_p11 = scmp.lt.s32.totalorder %s3823_s18, 4 }
  0x21   : > { %s5143_s26 = scalar_select %p3980_p8, 1, 0 }
  0x22   : > { %s5145_s23 = scalar_select %p3984_p9, 1, 0 }
  0x23   : > { %5144 = sst [smem:[#allocation21_spill]] %s5143_s26  ;;  %s3994_s30 = sshll.u32 %s3819_s17, 5 }
  0x24   : > { %5146 = sst [smem:[#allocation22_spill]] %s5145_s23  ;;  %s330_s20 = sand.u32 1, %s3823_s18  }
  0x25   : > { %s5147_s24 = scalar_select %p3988_p10, 1, 0 }
  0x26   : > { %s332_s8 = sand.u32 1, %s3791_s10   ;;  %s3302_s7 = sshll.u32 %s3815_s16, 4 }
  0x27   : > { %5148 = sst [smem:[#allocation23_spill]] %s5147_s24  ;;  %s3301_s15 = sshll.u32 %s332_s8, 6 }
  0x28   : > { %s340_s5 = sadd.s32 %s3302_s7, %s3994_s30  ;;  %s334_s14 = scalar_lea.vmem [#allocation5], %s3301_s15 }
  0x29   : > { %s344_s6 = sshll.u32 %s334_s14, 4  ;;  %s3304_s4 = sshll.u32 %s340_s5, 6  ;;  %s4000_s6 = int_to_ptr.vmem [resolvable:$true] %s344_s6 }
  0x2a   : > { %s5149_s1 = sld [smem:[#allocation27_spill]]  ;;  %p4011_p12 = pnand %p5110_p11, %p3974_p6 }
  0x2b   : > { %s4017_s5 = scalar_lea.sflag [#allocation6], %s330_s20 }
  0x2c   : > { %p3581_p4 = pneg %p4011_p12 }
  0x30   : > { %s4005_s26 = scalar_lea.hbm %s5149_s1, %s3304_s4  ;;  %s3584_s14 = scalar_lea.hbm %s5149_s1, 4096 }
  0x31   : > { %s3579_s7 = scalar_lea.hbm %s4005_s26, 1024  ;;  %p3585_p6 = scmp.lt.u32.totalorder %s4005_s26, %s5149_s1 }
  0x32   : > { %p3580_p3 = scmp.ne.s32.totalorder %s4005_s26, %s3579_s7  ;;  %p3586_p11 = scmp.lt.u32.totalorder %s3584_s14, %s3579_s7 }
  0x33   : > { %p3588_p1 = scmp.lt.u32.totalorder %s3579_s7, %s4005_s26 }
  0x34   : > { %p3582_p5 = pnand %p3581_p4, %p3580_p3  ;;  %p3587_p2 = por %p3586_p11, %p3585_p6 }
  0x36   : > { %p3583_p7 = pneg %p3582_p5  ;;  %p3589_p13 = por %p3588_p1, %p3587_p2 }
  0x38   : > { %p3590_p0 = pnand %p3589_p13, %p3583_p7 }
  0x3a   : > { %3593 = shalt.err (!%p3590_p0)
}
  0x3b   : > { %s3594_s25 = scalar_lea.vmem %s4000_s6, 1024  ;;  %s3825_s20 = smov [#allocation5]  }
  0x3c   : > { %p3595_p3 = scmp.ne.s32.totalorder %s4000_s6, %s3594_s25  ;;  %s3599_s3 = sshll.u32 %s3825_s20, 4  ;;  %s3600_s3 = int_to_ptr.vmem [resolvable:$false] %s3599_s3 }
  0x3d   : > { %s3601_s4 = scalar_lea.vmem %s3600_s3, 2048  ;;  %p3602_p9 = scmp.lt.s32.totalorder %s4000_s6, %s3600_s3 }
  0x3e   : > { %p3597_p5 = pnand %p3595_p3, %p3581_p4  ;;  %p3603_p11 = scmp.lt.s32.totalorder %s3601_s4, %s3594_s25 }
  0x40   : > { %p3598_p10 = pneg %p3597_p5  ;;  %p3604_p6 = por %p3603_p11, %p3602_p9 }
  0x42   : > { %p3605_p1 = pnand %p3604_p6, %p3598_p10 }
  0x44   : > { %3608 = shalt.err (!%p3605_p1)
}
  0x45   : > { %3448 = dma.hbm_to_vmem [thread:$0]  (!%p4011_p12), %s4005_s26, 1024, %s4000_s6, %s4017_s5  }
  0x46   : > { %p5151_p2 = scmp.lt.s32.totalorder %s3823_s18, 5  ;;  %p5152_p9 = scmp.ge.s32.totalorder %s3823_s18, 1 }
  0x47   : > { %p41_p13 = scmp.ge.s32.totalorder %s5214_s22, 2  ;;  %s3287_s7 = sshll.u32 %s3815_s16, 3 }
  0x48   : > { %p4049_p10 = pnand %p5152_p9, %p5151_p2  ;;  %s3288_s14 = sadd.s32 4294967295, %s3287_s7 }
  0x49   : > { %s3289_s15 = sshll.u32 %s5212_s21, 3  ;;  %s5216_s22 = smov (%p41_p13, %s5214_s22), 0 }
  0x4a   : > { %s5153_s8 = scalar_select %p4049_p10, 1, 0 }
  0x4b   : > { %5155 = sst [smem:[#allocation25_spill]] %s5216_s22  ;;  %p45_p12 = scmp.gt.s32.totalorder %s3288_s14, 0 }
  0x4c   : > { %5154 = sst [smem:[#allocation24_spill]] %s5153_s8  ;;  %s3290_s6 = sadd.s32 4294967295, %s3289_s15 }
  0x4d   : > { %p49_p0 = scmp.gt.s32.totalorder %s3290_s6, 0  ;;  %s4061_s26 = ssub.s32 %s3819_s17, %s5216_s22 }
  0x4e   : > { %s5218_s14 = smov (!%p45_p12, %s3288_s14), 0  ;;  %s56_s23 = sadd.s32 1, %s3803_s13 }
  0x4f   : > { %s5220_s6 = smov (!%p49_p0, %s3290_s6), 0  ;;  %p63_p4 = scmp.ne.s32.totalorder %s3803_s13, %s3799_s12 }
  0x50   : > { %s52_s25 = ssub.s32 %s5218_s14, %s5220_s6  ;;  %p69_p7 = scmp.ne.s32.totalorder %s3799_s12, %s3795_s11 }
  0x51   : > { %s53_s20 = sor.u32 %s52_s25, %s4061_s26  ;;  %p5156_p3 = scmp.eq.s32.totalorder %s3823_s18, 0 }
  0x52   : > { %p54_p11 = scmp.eq.s32.totalorder %s53_s20, 0  ;;  %p5158_p6 = scmp.eq.s32.totalorder %s3952_s19, 0 }
  0x53   : > { %p4071_p5 = por %p5156_p3, %p63_p4  ;;  %s5161_s1 = ssub.s32 %s3815_s16, %s5212_s21 }
  0x54   : > { %p4077_p1 = por %p5158_p6, %p69_p7  ;;  %s81_s22 = sor.u32 %s5161_s1, %s4061_s26 }
  0x55   : > { %s4085_s17 = sadd.s32 8, %s3287_s7  ;;  %p82_p2 = scmp.eq.s32.totalorder %s81_s22, 0 }
  0x56   : > { %s5159_s4 = scalar_select %p4077_p1, 1, 0 }
  0x57   : > { %s4088_s11 = scalar_select %p54_p11, %s3803_s13, %s56_s23  }
  0x58   : > { %5160 = sst [smem:[#allocation26_spill]] %s5159_s4  ;;  %s4091_s6 = sadd.s32 8, %s3289_s15 }
  0x59   : > { %s305_s25 = sand.u32 1, %s3803_s13   ;;  %s5162_s20 = sadd.s32 1, %s3791_s10 }
  0x5a   : > { %s4097_s24 = scalar_select %p82_p2, %s3791_s10, %s5162_s20  }
  0x5b   : > { %s3295_s9 = sshll.u32 %s305_s25, 3  ;;  %s3298_s21 = sshll.u32 %s5218_s14, 1 }
  0x5c   : > { %s319_s1 = sadd.s32 %s3994_s30, %s3298_s21  ;;  %s309_s16 = scalar_lea.vmem [#allocation2], %s3295_s9 }
  0x5d   : > { %s3300_s7 = sshll.u32 %s319_s1, 6  ;;  %s323_s4 = sshll.u32 %s309_s16, 4  ;;  %s4106_s4 = int_to_ptr.vmem [resolvable:$true] %s323_s4 }
  0x5e   : > { %s4104_s23 = scalar_lea.hbm %s5092_s0, %s3300_s7  ;;  %p5163_p12 = scmp.lt.s32.totalorder %s3823_s18, 4 }
  0x5f   : > { %s306_s9 = scalar_lea.sflag [#allocation3], %s305_s25  ;;  %s3609_s16 = scalar_lea.hbm %s4104_s23, 128 }
  0x60   : > { %p4112_p0 = pnand %p5163_p12, %p4071_p5  ;;  %p3610_p4 = scmp.ne.s32.totalorder %s4104_s23, %s3609_s16 }
  0x61   : > { %s3614_s8 = scalar_lea.hbm %s5092_s0, 4096  ;;  %p3615_p5 = scmp.lt.u32.totalorder %s4104_s23, %s5092_s0 }
  0x62   : > { %p3611_p7 = pneg %p4112_p0  ;;  %p3616_p6 = scmp.lt.u32.totalorder %s3614_s8, %s3609_s16 }
  0x63   : > { %p3618_p12 = scmp.lt.u32.totalorder %s3609_s16, %s4104_s23 }
  0x64   : > { %p3612_p3 = pnand %p3611_p7, %p3610_p4  ;;  %p3617_p2 = por %p3616_p6, %p3615_p5 }
  0x66   : > { %p3613_p11 = pneg %p3612_p3  ;;  %p3619_p13 = por %p3618_p12, %p3617_p2 }
  0x68   : > { %p3620_p9 = pnand %p3619_p13, %p3613_p11 }
  0x6a   : > { %3623 = shalt.err (!%p3620_p9)
}
  0x6b   : > { %s3624_s3 = scalar_lea.vmem %s4106_s4, 128  ;;  %s3826_s25 = smov [#allocation2]  }
  0x6c   : > { %p3625_p4 = scmp.ne.s32.totalorder %s4106_s4, %s3624_s3  ;;  %s3629_s20 = sshll.u32 %s3826_s25, 4  ;;  %s3630_s20 = int_to_ptr.vmem [resolvable:$false] %s3629_s20 }
  0x6d   : > { %s3631_s1 = scalar_lea.vmem %s3630_s20, 256  ;;  %p3632_p1 = scmp.lt.s32.totalorder %s4106_s4, %s3630_s20 }
  0x6e   : > { %p3627_p3 = pnand %p3625_p4, %p3611_p7  ;;  %p3633_p5 = scmp.lt.s32.totalorder %s3631_s1, %s3624_s3 }
  0x70   : > { %p3628_p8 = pneg %p3627_p3  ;;  %p3634_p6 = por %p3633_p5, %p3632_p1 }
  0x72   : > { %p3635_p2 = pnand %p3634_p6, %p3628_p8 }
  0x74   : > { %3638 = shalt.err (!%p3635_p2)
}
  0x75   : > { %3445 = dma.hbm_to_vmem [thread:$0]  (!%p4112_p0), %s4104_s23, 128, %s4106_s4, %s306_s9  }
  0x76   : > { %p5165_p8 = scmp.lt.s32.totalorder %s4085_s17, 15  ;;  %p5166_p1 = scmp.lt.s32.totalorder %s4091_s6, 15 }
  0x77   : > { %s120_s7 = sadd.s32 1, %s3779_s29  ;;  %p127_p9 = scmp.ne.s32.totalorder %s3779_s29, %s3775_s28 }
  0x78   : > { %s5222_s17 = smov (!%p5165_p8, %s4085_s17), 15  ;;  %s5224_s6 = smov (!%p5166_p1, %s4091_s6), 15 }
  0x79   : > { %s116_s22 = ssub.s32 %s5222_s17, %s5224_s6  ;;  %p133_p13 = scmp.ne.s32.totalorder %s3775_s28, %s3771_s27 }
  0x7a   : > { %s117_s16 = sor.u32 %s116_s22, %s4061_s26  ;;  %p5167_p7 = scmp.eq.s32.totalorder %s3823_s18, 0 }
  0x7b   : > { %p118_p12 = scmp.eq.s32.totalorder %s117_s16, 0  ;;  %p5169_p4 = scmp.eq.s32.totalorder %s3952_s19, 0 }
  0x7c   : > { %p4155_p11 = por %p127_p9, %p5167_p7  ;;  %s353_s23 = sand.u32 1, %s3779_s29  }
  0x7d   : > { %p4161_p3 = por %p133_p13, %p5169_p4  ;;  %s3307_s9 = sshll.u32 %s5222_s17, 1 }
  0x7e   : > { %s4167_s21 = scalar_select %p118_p12, %s3779_s29, %s120_s7  }
  0x7f   : > { %s5170_s4 = scalar_select %p4161_p3, 1, 0 }
  0x80   : > { %s3305_s6 = sshll.u32 %s353_s23, 3  ;;  %s365_s8 = sadd.s32 %s3307_s9, %s3994_s30 }
  0x81   : > { %s3309_s27 = sshll.u32 %s365_s8, 6  ;;  %s355_s3 = scalar_lea.vmem [#allocation7], %s3305_s6 }
  0x82   : > { %s4173_s15 = scalar_lea.hbm %s5094_s2, %s3309_s27  ;;  %s369_s25 = sshll.u32 %s355_s3, 4  ;;  %s4175_s25 = int_to_ptr.vmem [resolvable:$true] %s369_s25 }
  0x83   : > { %p5171_p0 = scmp.lt.s32.totalorder %s3823_s18, 4  ;;  %s3639_s30 = scalar_lea.hbm %s4173_s15, 128 }
  0x84   : > { %p3640_p6 = scmp.ne.s32.totalorder %s4173_s15, %s3639_s30  ;;  %s3644_s7 = scalar_lea.hbm %s5094_s2, 4096 }
  0x85   : > { %p4181_p5 = pnand %p5171_p0, %p4155_p11  ;;  %p3645_p9 = scmp.lt.u32.totalorder %s4173_s15, %s5094_s2 }
  0x86   : > { %p3646_p13 = scmp.lt.u32.totalorder %s3644_s7, %s3639_s30  ;;  %p3648_p11 = scmp.lt.u32.totalorder %s3639_s30, %s4173_s15 }
  0x87   : > { %p3641_p2 = pneg %p4181_p5 }
  0x88   : > { %p3647_p7 = por %p3646_p13, %p3645_p9 }
  0x89   : > { %p3642_p8 = pnand %p3641_p2, %p3640_p6 }
  0x8a   : > { %p3649_p12 = por %p3648_p11, %p3647_p7 }
  0x8b   : > { %p3643_p1 = pneg %p3642_p8 }
  0x8d   : > { %p3650_p4 = pnand %p3649_p12, %p3643_p1 }
  0x8f   : > { %3653 = shalt.err (!%p3650_p4)
}
  0x90   : > { %s3654_s12 = scalar_lea.vmem %s4175_s25, 128  ;;  %s3827_s23 = smov [#allocation7]  }
  0x91   : > { %p3655_p0 = scmp.ne.s32.totalorder %s4175_s25, %s3654_s12  ;;  %s3659_s9 = sshll.u32 %s3827_s23, 4  ;;  %s3660_s9 = int_to_ptr.vmem [resolvable:$false] %s3659_s9 }
  0x92   : > { %s3661_s6 = scalar_lea.vmem %s3660_s9, 256  ;;  %p3662_p3 = scmp.lt.s32.totalorder %s4175_s25, %s3660_s9 }
  0x93   : > { %p3657_p6 = pnand %p3655_p0, %p3641_p2  ;;  %p3663_p9 = scmp.lt.s32.totalorder %s3661_s6, %s3654_s12 }
  0x95   : > { %p3658_p8 = pneg %p3657_p6  ;;  %p3664_p13 = por %p3663_p9, %p3662_p3 }
  0x97   : > { %p3665_p7 = pnand %p3664_p13, %p3658_p8 }
  0x99   : > { %3668 = shalt.err (!%p3665_p7)
}
  0x9a   : > { %3451 = dma.hbm_to_vmem [thread:$0]  (!%p4181_p5), %s4173_s15, 128, %s4175_s25, %s4017_s5  }
  0x9b   : > { %378 = sbr.rel (%p4049_p10) target bundleno = 903 (0x387), region = 52  ;;  %s5174_s27 = sld [smem:[#allocation15_spill]] (!%p4049_p10) }
  0x9c   : > { %s5175_s26 = sld [smem:[#allocation26_spill]] (!%p4049_p10) }
  0xa1   : > { %s380_s14 = sand.u32 (!%p4049_p10), 1, %s5174_s27  }
  0xa2   : > { %s4214_s3 = sshll.u32 %s380_s14, 3  ;;  %s381_s30 = scalar_lea.sflag [#allocation3], %s380_s14 }
  0xa3   : > { %s384_s20 = scalar_lea.vmem [#allocation2], %s4214_s3  ;;  %p5176_p3 = scmp.ne.s32.totalorder %s5175_s26, 0 }
  0xa5   : > { %3754 = dma.done.wait (%p5176_p3), %s381_s30, 128  }
  0xa6   : > { %3756 = vsyncadd (%p5176_p3), %s381_s30, 4294967168  ;;  %s5177_s17 = sld [smem:[#allocation14_spill]]  ;;  %s5178_s1 = sld [smem:[#allocation21_spill]] }
  0xa7   : > { %s389_s5 = sand.u32 1, %s3952_s19  }
  0xa8   : > { %s390_s7 = scalar_lea.sflag [#allocation6], %s389_s5 }
  0xac   : > { %s4223_s15 = sand.u32 1, %s5177_s17   ;;  %p5179_p10 = scmp.ne.s32.totalorder %s5178_s1, 0 }
  0xad   : > { %s3312_s25 = sshll.u32 %s4223_s15, 6 }
  0xae   : > { %s4226_s22 = scalar_lea.vmem [#allocation5], %s3312_s25 }
  0xaf   : > { %3758 = dma.done.wait (%p5179_p10), %s390_s7, 1024  }
  0xb0   : > { %3760 = vsyncadd (%p5179_p10), %s390_s7, 4294966272  ;;  %s400_s16 = sand.u32 1, %s3775_s28   ;;  %p5180_p5 = scmp.ne.s32.totalorder %s5170_s4, 0 }
  0xb1   : > { %s4233_s12 = sshll.u32 %s400_s16, 3 }
  0xb2   : > { %s402_s23 = scalar_lea.vmem [#allocation7], %s4233_s12 }
  0xb3   : > { %3762 = dma.done.wait (%p5180_p5), %s390_s7, 128  }
  0xb4   : > { %3764 = vsyncadd (%p5180_p5), %s390_s7, 4294967168  ;;  %v3828_v0 = vmov 0   ;;  %s5181_s6 = sld [smem:[#allocation28_spill]]  ;;  %s5182_s26 = sld [smem:[#allocation29_spill]]  ;;  %v3829_v3 = vmov 0.0   ;;  %v474_v7 = vlaneseq  ;;  %v459_v13 = vld [vmem:[%s4226_s22] sm:$0xff] }
  0xb5   : > { %3577 = vset.pattern.permute.xlu0 %v3828_v0  ;;  %3578 = vset.pattern.permute.xlu1 %v3828_v0  ;;  %s5183_s30 = sld [smem:[#allocation31_spill]]  ;;  %v3830_v5 = vmov 839922192   ;;  %v460_v14 = vld [vmem:[%s4226_s22 + $0x8] sm:$0xff]  ;;  %v461_v15 = vld [vmem:[%s4226_s22 + $0x10] sm:$0xff]  ;;  %v462_v16 = vld [vmem:[%s4226_s22 + $0x18] sm:$0xff] }
  0xb6   : > { %655 = vmatprep.mubr.f32.mxu0 %v3829_v3  ;;  %726 = vmatprep.mubr.f32.mxu1 %v3829_v3  ;;  %v472_v6 = vunpack.c.l.s4 %v3830_v5  ;;  %v4251_v9 = vshrl.u32 %v474_v7, 7  ;;  %v463_v17 = vld [vmem:[%s4226_s22 + $0x20] sm:$0xff]  ;;  %v464_v18 = vld [vmem:[%s4226_s22 + $0x28] sm:$0xff]  ;;  %s5184_s17 = sld [smem:[#allocation16_spill]]  ;;  %v465_v27 = vld [vmem:[%s4226_s22 + $0x30] sm:$0xff]  ;;  %vm558_vm0 = vcmask 1043456  }
  0xb7   : > { %v466_v32 = vld [vmem:[%s4226_s22 + $0x38] sm:$0xff]  ;;  %s5185_s1 = sld [smem:[#allocation30_spill]]  ;;  %vm554_vm1 = vcmask 31744   ;;  %v523_v0 = vld [vmem:[%s402_s23] sm:$0xff]  ;;  %s3831_s23 = smov 127   ;;  %vm2592_vm2 = vcmask 1039360  }
  0xb8   : > { %v473_v8 = vunpack.c.0.s8 %v472_v6  ;;  %v515_v35 = vld [vmem:[%s384_s20] sm:$0xff]  ;;  %s3832_s19 = smov 1   ;;  %s5186_s8 = sld [smem:[#allocation32_spill]]  ;;  %vm2413_vm3 = vcmask 7168   ;;  %vm2789_vm4 = vcmask 130048   ;;  %vm2968_vm5 = vcmask 916480  }
  0xb9   : > { %s3833_s4 = smov 16   ;;  %s3834_s14 = smov 112  }
  0xba   : > { %v457_v1 = vld [vmem:[%s5181_s6] sm:$0xf]  ;;  %v476_v10 = vsub.s32 %v473_v8, %v4251_v9  ;;  %s3314_s12 = sshll.u32 %s4223_s15, 7  ;;  %s5188_s20 = sld [smem:[#allocation22_spill]] }
  0xbb   : > { %469 = vperm.xlu0 %3577, %v457_v1   ;;  %v458_v2 = vld [vmem:[%s5182_s26] sm:$0xf]  ;;  %s5187_s26 = sld [smem:[#allocation17_spill]]  ;;  %s5189_s7 = sld [smem:[#allocation33_spill]] }
  0xbc   : > { %v2327_v4 = vld [vmem:[%s5183_s30] sm:$0xff]  ;;  %p519_p2 = scmp.gt.s32.totalorder %s5184_s17, 0  ;;  %p527_p1 = scmp.lt.s32.totalorder %s5184_s17, 1 }
  0xbd   : > { %2330 = vperm.xlu1 %3578, %v2327_v4   ;;  %v3315_v46 = vld [vmem:[%s5185_s1 + $0x8] sm:$0xff]  ;;  %v551_v63 = vld [vmem:[%s5185_s1] sm:$0xff]  ;;  %v3364_v5 = vld [vmem:[%s5185_s1 + $0x10] sm:$0xff]  ;;  %s3133_s16 = scalar_lea.sflag [#allocation4], %s4223_s15 }
  0xbe   : > { %s520_s5 = scalar_select %p519_p2, 1.0, 0.0 }
  0xbf   : > { %489 = vperm.xlu0 %3577, %v458_v2   ;;  %s528_s22 = scalar_select %p527_p1, 1.0, 0.0 }
  0xc0   : > { %v521_v58 = vstv %s520_s5  ;;  %p5190_p12 = scmp.ne.s32.totalorder %s5188_s20, 0 }
  0xc1   : > { %v529_v6 = vstv %s528_s22 }
 0x13a   : > { %v470_v11 = vpop.permute.xlu0 %469 }
 0x13b   : > { %v4254_v12 = vrot.slane %v470_v11, %v476_v10 }
 0x13d   : > { %v479_v20 = vmul.f32 %v4254_v12, %v459_v13  ;;  %v480_v22 = vmul.f32 %v4254_v12, %v460_v14  ;;  %v481_v23 = vmul.f32 %v4254_v12, %v461_v15  ;;  %v482_v24 = vmul.f32 %v4254_v12, %v462_v16 }
 0x13e   : > { %v490_v19 = vpop.permute.xlu0 %489  ;;  %v483_v25 = vmul.f32 %v4254_v12, %v463_v17  ;;  %v484_v26 = vmul.f32 %v4254_v12, %v464_v18  ;;  %v485_v38 = vmul.f32 %v4254_v12, %v465_v27  ;;  %v486_v41 = vmul.f32 %v4254_v12, %v466_v32 }
 0x13f   : > { %v4263_v21 = vrot.slane %v490_v19, %v476_v10  ;;  %v516_v45 = vmul.f32 %v515_v35, %v4254_v12  ;;  %v524_v1 = vmul.f32 %v523_v0, %v4254_v12  ;;  %v2331_v10 = vpop.permute.xlu1 %2330 }
 0x141   : > { %v499_v28 = vadd.f32 %v4263_v21, %v479_v20  ;;  %v500_v29 = vadd.f32 %v4263_v21, %v480_v22  ;;  %v501_v30 = vadd.f32 %v4263_v21, %v481_v23  ;;  %v502_v31 = vadd.f32 %v4263_v21, %v482_v24 }
 0x142   : > { %v503_v33 = vadd.f32 %v4263_v21, %v483_v25  ;;  %v504_v34 = vadd.f32 %v4263_v21, %v484_v26  ;;  %v505_v44 = vadd.f32 %v4263_v21, %v485_v38  ;;  %v506_v49 = vadd.f32 %v4263_v21, %v486_v41 }
 0x143   : > { %v4280_v36 = vmax.f32 %v499_v28, 0.0  ;;  %v4282_v37 = vmax.f32 %v500_v29, 0.0  ;;  %v4286_v39 = vmax.f32 %v501_v30, 0.0  ;;  %v4288_v40 = vmax.f32 %v502_v31, 0.0 }
 0x144   : > { %v4302_v47 = vmax.f32 %v503_v33, 0.0  ;;  %v4304_v48 = vmax.f32 %v504_v34, 0.0  ;;  %v517_v50 = vadd.f32 %v516_v45, %v4263_v21  ;;  %v4327_v53 = vmax.f32 %v505_v44, 0.0 }
 0x145   : > { %v540_v42 = vcombine.high %v4280_v36, %v4280_v36  ;;  %v4295_v43 = vcombine.high %v4282_v37, %v4282_v37  ;;  %v4319_v51 = vcombine.high %v4286_v39, %v4286_v39  ;;  %v4323_v52 = vcombine.high %v4288_v40, %v4288_v40 }
 0x146   : > { %v4335_v54 = vcombine.high %v4302_v47, %v4302_v47  ;;  %v4339_v55 = vcombine.high %v4304_v48, %v4304_v48  ;;  %v4341_v56 = vmax.f32 %v506_v49, 0.0  ;;  %v518_v57 = vmax.f32 %v517_v50, 0.0  ;;  %v4599_v49 = vld [vmem:[%s5186_s8 + $0x1] ss:$4 sm:$0xff] }
 0x147   : > { %3316 = vmatprep.subr.msk.mxu0 %vm558_vm0, %v540_v42  ;;  %3319 = vmatprep.subr.msk.mxu1 %vm558_vm0, %v4295_v43  ;;  %v4357_v59 = vcombine.high %v4327_v53, %v4327_v53  ;;  %v525_v2 = vadd.f32 %v524_v1, %v4263_v21  ;;  %v4586_v44 = vsub.s32 1, %v4251_v9  ;;  %v4589_v45 = vsub.s32 2, %v4251_v9 }
 0x148   : > { %3317 = vmatpush1.msk.msra.mxu0 %vm558_vm0, %v4280_v36  ;;  %3320 = vmatpush1.msk.msra.mxu1 %vm558_vm0, %v4282_v37  ;;  %v4361_v60 = vcombine.high %v4341_v56, %v4341_v56  ;;  %v522_v61 = vmul.f32 %v521_v58, %v518_v57 }
 0x149   : > { %3318 = vmatmul.mubr.msk.f32.vlgmr.msra.gmra.mrb[0].mxu0 %vm554_vm1, %v3315_v46  ;;  %3321 = vmatmul.mubr.msk.f32.vlgmr.msra.gmra.mrb[0].mxu1 %vm554_vm1, %v3315_v46  ;;  %v526_v4 = vmax.f32 %v525_v2, 0.0 }
 0x14a   : > { %3322 = vmatprep.subr.msk.mxu0 %vm558_vm0, %v4319_v51  ;;  %3325 = vmatprep.subr.msk.mxu1 %vm558_vm0, %v4323_v52  ;;  %v532_v62 = vcombine.high %v522_v61, %v522_v61 }
 0x14b   : > { %3323 = vmatpush1.msk.msra.mxu0 %vm558_vm0, %v4286_v39  ;;  %3326 = vmatpush1.msk.msra.mxu1 %vm558_vm0, %v4288_v40  ;;  %v530_v7 = vmul.f32 %v529_v6, %v526_v4 }
 0x14c   : > { %3328 = vmatprep.subr.msk.mxu0 %vm558_vm0, %v4335_v54  ;;  %3331 = vmatprep.subr.msk.mxu1 %vm558_vm0, %v4339_v55 }
 0x14d   : > { %797 = vmatprep.mubr.f32.mxu0 %v3829_v3  ;;  %868 = vmatprep.mubr.f32.mxu1 %v3829_v3  ;;  %v550_v8 = vcombine.high %v530_v7, %v530_v7 }
 0x14e   : > { %3324 = vmatmul.mubr.msk.f32.vlgmr.msra.gmra.mrb[2].mxu0 %vm554_vm1, %v3315_v46  ;;  %3327 = vmatmul.mubr.msk.f32.vlgmr.msra.gmra.mrb[2].mxu1 %vm554_vm1, %v3315_v46 }
 0x14f   : > { %3329 = vmatpush1.msk.msra.mxu0 %vm558_vm0, %v4302_v47  ;;  %3332 = vmatpush1.msk.msra.mxu1 %vm558_vm0, %v4304_v48 }
 0x150   : > { %3334 = vmatprep.subr.msk.mxu0 %vm558_vm0, %v4357_v59  ;;  %3337 = vmatprep.subr.msk.mxu1 %vm558_vm0, %v4361_v60 }
 0x151   : > { %939 = vmatprep.mubr.f32.mxu0 %v3829_v3  ;;  %1010 = vmatprep.mubr.f32.mxu1 %v3829_v3 }
 0x152   : > { %3330 = vmatmul.mubr.msk.f32.vlgmr.msra.gmra.mrb[4].mxu0 %vm554_vm1, %v3315_v46  ;;  %3333 = vmatmul.mubr.msk.f32.vlgmr.msra.gmra.mrb[4].mxu1 %vm554_vm1, %v3315_v46 }
 0x153   : > { %3335 = vmatpush1.msk.msra.mxu0 %vm558_vm0, %v4327_v53  ;;  %3338 = vmatpush1.msk.msra.mxu1 %vm558_vm0, %v4341_v56 }
 0x154   : > { %3340 = vmatprep.subr.msk.mxu0 %vm558_vm0, %v532_v62  ;;  %3343 = vmatprep.subr.msk.mxu1 %vm558_vm0, %v540_v42 }
 0x155   : > { %1081 = vmatprep.mubr.f32.mxu0 %v3829_v3  ;;  %1152 = vmatprep.mubr.f32.mxu1 %v3829_v3 }
 0x156   : > { %3336 = vmatmul.mubr.msk.f32.vlgmr.msra.gmra.mrb[6].mxu0 %vm554_vm1, %v3315_v46  ;;  %3339 = vmatmul.mubr.msk.f32.vlgmr.msra.gmra.mrb[6].mxu1 %vm554_vm1, %v3315_v46  ;;  %v4594_v46 = vld [vmem:[%s5186_s8] ss:$4 sm:$0xff] }
 0x157   : > { %3341 = vmatpush1.msk.msra.mxu0 %vm558_vm0, %v522_v61  ;;  %3344 = vmatpush1.msk.msra.mxu1 %vm558_vm0, %v4280_v36  ;;  %v2455_v50 = vrot.slane %v4594_v46, %v4586_v44  ;;  %v2639_v61 = vrot.slane %v4599_v49, %v4589_v45 }
 0x158   : > { %3346 = vmatprep.subr.msk.mxu0 %vm558_vm0, %v4295_v43  ;;  %3349 = vmatprep.subr.msk.mxu1 %vm558_vm0, %v4319_v51 }
 0x159   : > { %1230 = vmatprep.mubr.f32.mxu0 %v3829_v3  ;;  %1301 = vmatprep.mubr.f32.mxu1 %v3829_v3 }
 0x15a   : > { %3342 = vmatmul.mubr.msk.f32.vlgmr.msra.gmra.mrb[0].mxu0 %vm554_vm1, %v551_v63  ;;  %3345 = vmatmul.mubr.msk.f32.vlgmr.msra.gmra.mrb[0].mxu1 %vm554_vm1, %v551_v63 }
 0x15b   : > { %3347 = vmatpush1.msk.msra.mxu0 %vm558_vm0, %v4282_v37  ;;  %3350 = vmatpush1.msk.msra.mxu1 %vm558_vm0, %v4286_v39 }
 0x15c   : > { %3352 = vmatprep.subr.msk.mxu0 %vm558_vm0, %v4323_v52  ;;  %3355 = vmatprep.subr.msk.mxu1 %vm558_vm0, %v4335_v54 }
 0x15d   : > { %1372 = vmatprep.mubr.f32.mxu0 %v3829_v3  ;;  %1443 = vmatprep.mubr.f32.mxu1 %v3829_v3 }
 0x15e   : > { %3348 = vmatmul.mubr.msk.f32.vlgmr.msra.gmra.mrb[2].mxu0 %vm554_vm1, %v551_v63  ;;  %3351 = vmatmul.mubr.msk.f32.vlgmr.msra.gmra.mrb[2].mxu1 %vm554_vm1, %v551_v63 }
 0x15f   : > { %3353 = vmatpush1.msk.msra.mxu0 %vm558_vm0, %v4288_v40  ;;  %3356 = vmatpush1.msk.msra.mxu1 %vm558_vm0, %v4302_v47 }
 0x160   : > { %3358 = vmatprep.subr.msk.mxu0 %vm558_vm0, %v4339_v55  ;;  %3361 = vmatprep.subr.msk.mxu1 %vm558_vm0, %v4357_v59 }
 0x161   : > { %1514 = vmatprep.mubr.f32.mxu0 %v3829_v3  ;;  %1585 = vmatprep.mubr.f32.mxu1 %v3829_v3 }
 0x162   : > { %3354 = vmatmul.mubr.msk.f32.vlgmr.msra.gmra.mrb[4].mxu0 %vm554_vm1, %v551_v63  ;;  %3357 = vmatmul.mubr.msk.f32.vlgmr.msra.gmra.mrb[4].mxu1 %vm554_vm1, %v551_v63 }
 0x163   : > { %3359 = vmatpush1.msk.msra.mxu0 %vm558_vm0, %v4304_v48  ;;  %3362 = vmatpush1.msk.msra.mxu1 %vm558_vm0, %v4327_v53 }
 0x164   : > { %3365 = vmatprep.subr.msk.mxu0 %vm558_vm0, %v4295_v43  ;;  %3368 = vmatprep.subr.msk.mxu1 %vm558_vm0, %v4319_v51  ;;  %v2459_v51 = vrot.slane %v4594_v46, %v4589_v45 }
 0x165   : > { %1656 = vmatprep.mubr.f32.mxu0 %v3829_v3  ;;  %1727 = vmatprep.mubr.f32.mxu1 %v3829_v3 }
 0x166   : > { %3360 = vmatmul.mubr.msk.f32.vlgmr.msra.gmra.mrb[6].mxu0 %vm554_vm1, %v551_v63  ;;  %3363 = vmatmul.mubr.msk.f32.vlgmr.msra.gmra.mrb[6].mxu1 %vm554_vm1, %v551_v63 }
 0x167   : > { %3366 = vmatpush1.msk.msra.mxu0 %vm558_vm0, %v4282_v37  ;;  %3369 = vmatpush1.msk.msra.mxu1 %vm558_vm0, %v4286_v39 }
 0x168   : > { %3371 = vmatprep.subr.msk.mxu0 %vm558_vm0, %v4323_v52  ;;  %3374 = vmatprep.subr.msk.mxu1 %vm558_vm0, %v4335_v54  ;;  %v2635_v52 = vrot.slane %v4599_v49, %v4586_v44 }
 0x169   : > { %1807 = vmatprep.mubr.f32.mxu0 %v3829_v3  ;;  %1878 = vmatprep.mubr.f32.mxu1 %v3829_v3 }
 0x16a   : > { %3367 = vmatmul.mubr.msk.f32.vlgmr.msra.gmra.mrb[0].mxu0 %vm554_vm1, %v3364_v5  ;;  %3370 = vmatmul.mubr.msk.f32.vlgmr.msra.gmra.mrb[0].mxu1 %vm554_vm1, %v3364_v5 }
 0x16b   : > { %3372 = vmatpush1.msk.msra.mxu0 %vm558_vm0, %v4288_v40  ;;  %3375 = vmatpush1.msk.msra.mxu1 %vm558_vm0, %v4302_v47 }
 0x16c   : > { %3377 = vmatprep.subr.msk.mxu0 %vm558_vm0, %v4339_v55  ;;  %3380 = vmatprep.subr.msk.mxu1 %vm558_vm0, %v4357_v59  ;;  %v4610_v55 = vsub.s32 3, %v4251_v9 }
 0x16d   : > { %1949 = vmatprep.mubr.f32.mxu0 %v3829_v3  ;;  %2020 = vmatprep.mubr.f32.mxu1 %v3829_v3 }
 0x16e   : > { %3373 = vmatmul.mubr.msk.f32.vlgmr.msra.gmra.mrb[2].mxu0 %vm554_vm1, %v3364_v5  ;;  %3376 = vmatmul.mubr.msk.f32.vlgmr.msra.gmra.mrb[2].mxu1 %vm554_vm1, %v3364_v5  ;;  %v2463_v1 = vrot.slane %v4594_v46, %v4610_v55  ;;  %v2643_v6 = vrot.slane %v4599_v49, %v4610_v55 }
 0x16f   : > { %3378 = vmatpush1.msk.msra.mxu0 %vm558_vm0, %v4304_v48  ;;  %3381 = vmatpush1.msk.msra.mxu1 %vm558_vm0, %v4327_v53 }
 0x170   : > { %3383 = vmatprep.subr.msk.mxu0 %vm558_vm0, %v4361_v60  ;;  %3386 = vmatprep.subr.msk.mxu1 %vm558_vm0, %v550_v8 }
 0x171   : > { %2091 = vmatprep.mubr.f32.mxu0 %v3829_v3  ;;  %2162 = vmatprep.mubr.f32.mxu1 %v3829_v3 }
 0x172   : > { %3379 = vmatmul.mubr.msk.f32.vlgmr.msra.gmra.mrb[4].mxu0 %vm554_vm1, %v3364_v5  ;;  %3382 = vmatmul.mubr.msk.f32.vlgmr.msra.gmra.mrb[4].mxu1 %vm554_vm1, %v3364_v5 }
 0x173   : > { %3384 = vmatpush1.msk.msra.mxu0 %vm558_vm0, %v4341_v56  ;;  %3387 = vmatpush1.msk.msra.mxu1 %vm558_vm0, %v530_v7 }
 0x174   : > { %2233 = vmatprep.mubr.f32.mxu0 %v3829_v3  ;;  %2304 = vmatprep.mubr.f32.mxu1 %v3829_v3 }
 0x176   : > { %3385 = vmatmul.mubr.msk.f32.vlgmr.msra.gmra.mrb[6].mxu0 %vm554_vm1, %v3364_v5  ;;  %3388 = vmatmul.mubr.msk.f32.vlgmr.msra.gmra.mrb[6].mxu1 %vm554_vm1, %v3364_v5 }
 0x23d   : > { %v1809_v11 = vpop.f32.mrb[0].mxu0  ;;  %v1880_v12 = vpop.f32.mrb[0].mxu1 }
 0x23e   : > { %v4485_v13 = vadd.f32 %v2331_v10, %v1809_v11  ;;  %v1811_v14 = vpop.f32.mrb[1].mxu0  ;;  %v1882_v15 = vpop.f32.mrb[1].mxu1  ;;  %v4491_v17 = vadd.f32 %v2331_v10, %v1880_v12 }
 0x23f   : > { %v4497_v22 = vadd.f32 %v2331_v10, %v1811_v14  ;;  %v4503_v27 = vadd.f32 %v2331_v10, %v1882_v15 }
 0x240   : > { %2560 = vrot.lane.b32.xlu1 %v4485_v13, %s3831_s23  ;;  %2383 = vrot.lane.b32.xlu0 %v4485_v13, %s3832_s19 }
 0x241   : > { %v1951_v3 = vpop.f32.mrb[2].mxu0  ;;  %v2022_v16 = vpop.f32.mrb[2].mxu1 }
 0x242   : > { %v1953_v18 = vpop.f32.mrb[3].mxu0  ;;  %v2024_v19 = vpop.f32.mrb[3].mxu1  ;;  %v4509_v30 = vadd.f32 %v2331_v10, %v1951_v3  ;;  %v4515_v31 = vadd.f32 %v2331_v10, %v2022_v16 }
 0x243   : > { %v4521_v32 = vadd.f32 %v2331_v10, %v1953_v18  ;;  %v4527_v33 = vadd.f32 %v2331_v10, %v2024_v19  ;;  %v4642_v19 = vsub.s32 5, %v4251_v9 }
 0x244   : > { %2564 = vrot.lane.b32.xlu1 %v4491_v17, %s3831_s23  ;;  %2387 = vrot.lane.b32.xlu0 %v4491_v17, %s3832_s19 }
 0x245   : > { %v2093_v20 = vpop.f32.mrb[4].mxu0  ;;  %v2164_v21 = vpop.f32.mrb[4].mxu1 }
 0x246   : > { %v2095_v23 = vpop.f32.mrb[5].mxu0  ;;  %v2166_v24 = vpop.f32.mrb[5].mxu1  ;;  %v4533_v34 = vadd.f32 %v2331_v10, %v2093_v20  ;;  %v4539_v35 = vadd.f32 %v2331_v10, %v2164_v21  ;;  %v4645_v20 = vsub.s32 6, %v4251_v9 }
 0x247   : > { %v4545_v36 = vadd.f32 %v2331_v10, %v2095_v23  ;;  %v4551_v37 = vadd.f32 %v2331_v10, %v2166_v24 }
 0x248   : > { %2562 = vrot.lane.b32.xlu0 %v4497_v22, %s3831_s23  ;;  %2385 = vrot.lane.b32.xlu1 %v4497_v22, %s3832_s19 }
 0x249   : > { %v2235_v25 = vpop.f32.mrb[6].mxu0  ;;  %v2306_v26 = vpop.f32.mrb[6].mxu1 }
 0x24a   : > { %v2237_v28 = vpop.f32.mrb[7].mxu0  ;;  %v2308_v29 = vpop.f32.mrb[7].mxu1  ;;  %v4557_v38 = vadd.f32 %v2331_v10, %v2235_v25  ;;  %v4563_v39 = vadd.f32 %v2331_v10, %v2306_v26 }
 0x24b   : > { %v4565_v40 = vadd.f32 %v2331_v10, %v2308_v29  ;;  %v4571_v41 = vadd.f32 %v2331_v10, %v2237_v28  ;;  %v4628_v10 = vsub.s32 4, %v4251_v9  ;;  %v2471_v28 = vrot.slane %v4594_v46, %v4642_v19 }
 0x24c   : > { %2566 = vrot.lane.b32.xlu0 %v4503_v27, %s3831_s23  ;;  %2389 = vrot.lane.b32.xlu1 %v4503_v27, %s3832_s19  ;;  %v2475_v29 = vrot.slane %v4594_v46, %v4645_v20 }
 0x24d   : > { %v2647_v25 = vrot.slane %v4599_v49, %v4628_v10 }
 0x250   : > { %2568 = vrot.lane.b32.xlu1 %v4509_v30, %s3831_s23  ;;  %2391 = vrot.lane.b32.xlu0 %v4509_v30, %s3832_s19 }
 0x254   : > { %2572 = vrot.lane.b32.xlu1 %v4515_v31, %s3831_s23  ;;  %2395 = vrot.lane.b32.xlu0 %v4515_v31, %s3832_s19 }
 0x258   : > { %2570 = vrot.lane.b32.xlu0 %v4521_v32, %s3831_s23  ;;  %2393 = vrot.lane.b32.xlu1 %v4521_v32, %s3832_s19 }
 0x25c   : > { %2574 = vrot.lane.b32.xlu0 %v4527_v33, %s3831_s23  ;;  %2397 = vrot.lane.b32.xlu1 %v4527_v33, %s3832_s19 }
 0x260   : > { %2576 = vrot.lane.b32.xlu1 %v4533_v34, %s3831_s23  ;;  %2399 = vrot.lane.b32.xlu0 %v4533_v34, %s3832_s19 }
 0x264   : > { %2580 = vrot.lane.b32.xlu1 %v4539_v35, %s3831_s23  ;;  %2403 = vrot.lane.b32.xlu0 %v4539_v35, %s3832_s19 }
 0x268   : > { %2578 = vrot.lane.b32.xlu0 %v4545_v36, %s3831_s23  ;;  %2401 = vrot.lane.b32.xlu1 %v4545_v36, %s3832_s19 }
 0x26c   : > { %2582 = vrot.lane.b32.xlu0 %v4551_v37, %s3831_s23  ;;  %2405 = vrot.lane.b32.xlu1 %v4551_v37, %s3832_s19 }
 0x270   : > { %2584 = vrot.lane.b32.xlu1 %v4557_v38, %s3831_s23  ;;  %2407 = vrot.lane.b32.xlu0 %v4557_v38, %s3832_s19 }
 0x274   : > { %2365 = vrot.lane.b32.xlu1 %v4565_v40, %s3832_s19  ;;  %2411 = vrot.lane.b32.xlu0 %v4563_v39, %s3832_s19 }
 0x278   : > { %2586 = vrot.lane.b32.xlu0 %v4571_v41, %s3831_s23  ;;  %2409 = vrot.lane.b32.xlu1 %v4571_v41, %s3832_s19  ;;  %s3835_s19 = smov [#allocation8]  }
 0x279   : > { %s3673_s9 = sshll.u32 %s3835_s19, 4  ;;  %s3674_s9 = int_to_ptr.vmem [resolvable:$false] %s3673_s9 }
 0x27a   : > { %s3675_s6 = scalar_lea.vmem %s3674_s9, 4096 }
 0x27c   : > { %2590 = vrot.lane.b32.xlu0 %v4565_v40, %s3831_s23  ;;  %2588 = vrot.lane.b32.xlu1 %v4563_v39, %s3831_s23  ;;  %s4880_s23 = scalar_lea.vmem [#allocation8], %s3314_s12 }
 0x27d   : > { %s3149_s3 = sshll.u32 %s4880_s23, 4  ;;  %s5013_s3 = int_to_ptr.vmem [resolvable:$true] %s3149_s3 }
 0x27e   : > { %s3669_s12 = scalar_lea.vmem %s5013_s3, 2048  ;;  %p3676_p6 = scmp.lt.s32.totalorder %s5013_s3, %s3674_s9 }
 0x27f   : > { %p3670_p11 = scmp.ne.s32.totalorder %s5013_s3, %s3669_s12  ;;  %p3677_p8 = scmp.lt.s32.totalorder %s3675_s6, %s3669_s12 }
 0x281   : > { %p3671_p4 = pnand %p3670_p11, %p5190_p12  ;;  %p3678_p9 = por %p3677_p8, %p3676_p6 }
 0x283   : > { %p3672_p0 = pneg %p3671_p4 }
 0x285   : > { %p3679_p13 = pnand %p3678_p9, %p3672_p0 }
 0x2b2   : > { %v4581_v42 = vpop.permute.xlu1 %2560  ;;  %v4583_v43 = vpop.permute.xlu0 %2383 }
 0x2b6   : > { %v2565_v47 = vpop.permute.xlu1 %2564  ;;  %v2388_v48 = vpop.permute.xlu0 %2387 }
 0x2ba   : > { %v4607_v53 = vpop.permute.xlu0 %2562  ;;  %v2386_v54 = vpop.permute.xlu1 %2385 }
 0x2bb   : > { %v2594_v56 = vsel %vm2592_vm2, %v4607_v53, %v2565_v47  ;;  %v2414_v57 = vsel %vm2413_vm3, %v4583_v43, %v2386_v54  ;;  %v2415_v58 = vsel %vm2413_vm3, %v2386_v54, %v2388_v48 }
 0x2bc   : > { %v2529_v59 = vmul.f32 %v2455_v50, %v2414_v57  ;;  %v2530_v60 = vmul.f32 %v2459_v51, %v2415_v58  ;;  %v2709_v62 = vmul.f32 %v2635_v52, %v2594_v56  ;;  %v2655_v51 = vrot.slane %v4599_v49, %v4645_v20 }
 0x2bd   : > { %v4671_v57 = vsub.s32 7, %v4251_v9 }
 0x2be   : > { %v2545_v63 = vadd.f32 %v2529_v59, %v4497_v22  ;;  %v2567_v0 = vpop.permute.xlu0 %2566  ;;  %v2390_v2 = vpop.permute.xlu1 %2389  ;;  %v2546_v7 = vadd.f32 %v2530_v60, %v4491_v17  ;;  %v2467_v17 = vrot.slane %v4594_v46, %v4628_v10 }
 0x2bf   : > { %v2595_v4 = vsel %vm2592_vm2, %v2565_v47, %v2567_v0  ;;  %v2416_v5 = vsel %vm2413_vm3, %v2388_v48, %v2390_v2  ;;  %v2651_v47 = vrot.slane %v4599_v49, %v4642_v19 }
 0x2c0   : > { %v2710_v8 = vmul.f32 %v2639_v61, %v2595_v4  ;;  %v4630_v11 = vadd.f32 %v2709_v62, %v2545_v63  ;;  %v2531_v12 = vmul.f32 %v2463_v1, %v2416_v5  ;;  %v2479_v5 = vrot.slane %v4594_v46, %v4671_v57 }
 0x2c2   : > { %v2569_v14 = vpop.permute.xlu1 %2568  ;;  %v2392_v15 = vpop.permute.xlu0 %2391  ;;  %2761 = vrot.lane.b32.xlu1 %v4630_v11, %s3833_s4  ;;  %v4634_v3 = vadd.f32 %v2710_v8, %v2546_v7  ;;  %v2547_v22 = vadd.f32 %v2531_v12, %v4503_v27  ;;  %v4692_v8 = vld [vmem:[%s5186_s8 + $0x20] ss:$4 sm:$0xff]  ;;  %v4695_v12 = vsub.s32 0, %v4251_v9  ;;  %v4713_v9 = vld [vmem:[%s5186_s8 + $0x21] ss:$4 sm:$0xff] }
 0x2c3   : > { %v2596_v16 = vsel %vm2592_vm2, %v2567_v0, %v2569_v14  ;;  %v2417_v21 = vsel %vm2413_vm3, %v2390_v2, %v2392_v15 }
 0x2c4   : > { %v2711_v18 = vmul.f32 %v2643_v6, %v2596_v16  ;;  %2763 = vrot.lane.b32.xlu0 %v4634_v3, %s3833_s4  ;;  %v2532_v26 = vmul.f32 %v2467_v17, %v2417_v21 }
 0x2c6   : > { %v2573_v23 = vpop.permute.xlu1 %2572  ;;  %v2396_v24 = vpop.permute.xlu0 %2395  ;;  %2940 = vrot.lane.b32.xlu1 %v4634_v3, %s3834_s14  ;;  %v4659_v27 = vadd.f32 %v2711_v18, %v2547_v22  ;;  %v2548_v58 = vadd.f32 %v2532_v26, %v4509_v30  ;;  %v2483_v22 = vrot.slane %v4692_v8, %v4695_v12 }
 0x2c8   : > { %2938 = vrot.lane.b32.xlu0 %v4630_v11, %s3834_s14 }
 0x2ca   : > { %v2571_v48 = vpop.permute.xlu0 %2570  ;;  %v2394_v50 = vpop.permute.xlu1 %2393  ;;  %2765 = vrot.lane.b32.xlu1 %v4659_v27, %s3833_s4 }
 0x2cb   : > { %v2597_v52 = vsel %vm2592_vm2, %v2569_v14, %v2571_v48  ;;  %v2418_v54 = vsel %vm2413_vm3, %v2392_v15, %v2394_v50  ;;  %v2419_v56 = vsel %vm2413_vm3, %v2394_v50, %v2396_v24  ;;  %v2598_v62 = vsel %vm2592_vm2, %v2571_v48, %v2573_v23 }
 0x2cc   : > { %v2712_v59 = vmul.f32 %v2647_v25, %v2597_v52  ;;  %v2533_v60 = vmul.f32 %v2471_v28, %v2418_v54  ;;  %v2534_v61 = vmul.f32 %v2475_v29, %v2419_v56  ;;  %2942 = vrot.lane.b32.xlu0 %v4659_v27, %s3834_s14  ;;  %v2713_v30 = vmul.f32 %v2651_v47, %v2598_v62 }
 0x2cd   : > { %v2663_v28 = vrot.slane %v4713_v9, %v4695_v12  ;;  %v2487_v29 = vrot.slane %v4692_v8, %v4586_v44  ;;  %v2491_v50 = vrot.slane %v4692_v8, %v4589_v45 }
 0x2ce   : > { %v2549_v63 = vadd.f32 %v2533_v60, %v4521_v32  ;;  %v2575_v0 = vpop.permute.xlu0 %2574  ;;  %v2398_v1 = vpop.permute.xlu1 %2397  ;;  %v4678_v2 = vadd.f32 %v2712_v59, %v2548_v58  ;;  %v2550_v6 = vadd.f32 %v2534_v61, %v4515_v31  ;;  %v2659_v31 = vrot.slane %v4599_v49, %v4671_v57 }
 0x2cf   : > { %v2599_v4 = vsel %vm2592_vm2, %v2573_v23, %v2575_v0  ;;  %v2420_v32 = vsel %vm2413_vm3, %v2396_v24, %v2398_v1  ;;  %v2671_v59 = vrot.slane %v4713_v9, %v4589_v45 }
 0x2d0   : > { %v2714_v7 = vmul.f32 %v2655_v51, %v2599_v4  ;;  %2767 = vrot.lane.b32.xlu0 %v4678_v2, %s3833_s4  ;;  %2944 = vrot.lane.b32.xlu1 %v4678_v2, %s3834_s14  ;;  %v4701_v18 = vadd.f32 %v2713_v30, %v2549_v63  ;;  %v2535_v21 = vmul.f32 %v2479_v5, %v2420_v32 }
 0x2d2   : > { %v2577_v14 = vpop.permute.xlu1 %2576  ;;  %v2400_v15 = vpop.permute.xlu0 %2399  ;;  %v4699_v16 = vadd.f32 %v2714_v7, %v2550_v6  ;;  %v2551_v47 = vadd.f32 %v2535_v21, %v4527_v33 }
 0x2d3   : > { %v2600_v17 = vsel %vm2592_vm2, %v2575_v0, %v2577_v14  ;;  %v2421_v23 = vsel %vm2413_vm3, %v2398_v1, %v2400_v15  ;;  %v2667_v0 = vrot.slane %v4713_v9, %v4586_v44 }
 0x2d4   : > { %2771 = vrot.lane.b32.xlu0 %v4699_v16, %s3833_s4  ;;  %2769 = vrot.lane.b32.xlu1 %v4701_v18, %s3833_s4  ;;  %v2715_v24 = vmul.f32 %v2659_v31, %v2600_v17  ;;  %v2536_v48 = vmul.f32 %v2483_v22, %v2421_v23  ;;  %v2495_v31 = vrot.slane %v4692_v8, %v4610_v55 }
 0x2d6   : > { %v2581_v25 = vpop.permute.xlu1 %2580  ;;  %v2404_v26 = vpop.permute.xlu0 %2403  ;;  %v4727_v54 = vadd.f32 %v2715_v24, %v2551_v47  ;;  %v2552_v60 = vadd.f32 %v2536_v48, %v4533_v34 }
 0x2d8   : > { %2946 = vrot.lane.b32.xlu0 %v4701_v18, %s3834_s14  ;;  %2948 = vrot.lane.b32.xlu1 %v4699_v16, %s3834_s14 }
 0x2da   : > { %v2579_v51 = vpop.permute.xlu0 %2578  ;;  %v2402_v52 = vpop.permute.xlu1 %2401 }
 0x2db   : > { %v2601_v56 = vsel %vm2592_vm2, %v2577_v14, %v2579_v51  ;;  %v2422_v58 = vsel %vm2413_vm3, %v2400_v15, %v2402_v52  ;;  %v2423_v33 = vsel %vm2413_vm3, %v2402_v52, %v2404_v26  ;;  %v2602_v1 = vsel %vm2592_vm2, %v2579_v51, %v2581_v25 }
 0x2dc   : > { %v2716_v61 = vmul.f32 %v2663_v28, %v2601_v56  ;;  %v2537_v62 = vmul.f32 %v2487_v29, %v2422_v58  ;;  %v2538_v63 = vmul.f32 %v2491_v50, %v2423_v33  ;;  %2950 = vrot.lane.b32.xlu0 %v4727_v54, %s3834_s14  ;;  %2773 = vrot.lane.b32.xlu1 %v4727_v54, %s3833_s4 }
 0x2dd   : > { %v2717_v14 = vmul.f32 %v2667_v0, %v2602_v1  ;;  %v2451_v29 = vrot.slane %v4594_v46, %v4695_v12  ;;  %v2511_v56 = vrot.slane %v4692_v8, %v4671_v57  ;;  %v2679_v58 = vrot.slane %v4713_v9, %v4628_v10 }
 0x2de   : > { %v2583_v4 = vpop.permute.xlu0 %2582  ;;  %v2406_v5 = vpop.permute.xlu1 %2405  ;;  %v4742_v30 = vadd.f32 %v2716_v61, %v2552_v60  ;;  %v2553_v34 = vadd.f32 %v2537_v62, %v4545_v36  ;;  %v2554_v7 = vadd.f32 %v2538_v63, %v4539_v35  ;;  %v2675_v36 = vrot.slane %v4713_v9, %v4610_v55 }
 0x2df   : > { %v2603_v6 = vsel %vm2592_vm2, %v2581_v25, %v2583_v4  ;;  %v2424_v15 = vsel %vm2413_vm3, %v2404_v26, %v2406_v5  ;;  %v2499_v25 = vrot.slane %v4692_v8, %v4628_v10  ;;  %v2507_v62 = vrot.slane %v4692_v8, %v4645_v20 }
 0x2e0   : > { %v2718_v32 = vmul.f32 %v2671_v59, %v2603_v6  ;;  %2775 = vrot.lane.b32.xlu0 %v4742_v30, %s3833_s4  ;;  %2952 = vrot.lane.b32.xlu1 %v4742_v30, %s3834_s14  ;;  %v4759_v23 = vadd.f32 %v2717_v14, %v2553_v34  ;;  %v2539_v24 = vmul.f32 %v2495_v31, %v2424_v15 }
 0x2e1   : > { %v2691_v63 = vrot.slane %v4713_v9, %v4671_v57  ;;  %v2593_v0 = vsel %vm2592_vm2, %v4581_v42, %v4607_v53  ;;  %v2683_v15 = vrot.slane %v4713_v9, %v4642_v19 }
 0x2e2   : > { %v2585_v17 = vpop.permute.xlu1 %2584  ;;  %v2408_v21 = vpop.permute.xlu0 %2407  ;;  %v4756_v22 = vadd.f32 %v2718_v32, %v2554_v7  ;;  %v2555_v51 = vadd.f32 %v2539_v24, %v4551_v37  ;;  %v2631_v37 = vrot.slane %v4599_v49, %v4695_v12  ;;  %v2503_v49 = vrot.slane %v4692_v8, %v4642_v19 }
 0x2e3   : > { %v2604_v35 = vsel %vm2592_vm2, %v2583_v4, %v2585_v17  ;;  %v2425_v26 = vsel %vm2413_vm3, %v2406_v5, %v2408_v21 }
 0x2e4   : > { %2779 = vrot.lane.b32.xlu0 %v4756_v22, %s3833_s4  ;;  %2777 = vrot.lane.b32.xlu1 %v4759_v23, %s3833_s4  ;;  %v2719_v28 = vmul.f32 %v2675_v36, %v2604_v35  ;;  %v2540_v52 = vmul.f32 %v2499_v25, %v2425_v26  ;;  %v2708_v14 = vmul.f32 %v2631_v37, %v2593_v0 }
 0x2e6   : > { %v2366_v47 = vpop.permute.xlu1 %2365  ;;  %v2412_v48 = vpop.permute.xlu0 %2411  ;;  %v4782_v60 = vadd.f32 %v2719_v28, %v2555_v51  ;;  %v2556_v1 = vadd.f32 %v2540_v52, %v4557_v38  ;;  %v2687_v38 = vrot.slane %v4713_v9, %v4645_v20 }
 0x2e7   : > { %v2445_v50 = vsel %vm2413_vm3, %v2366_v47, %v4583_v43  ;;  %v2428_v33 = vsel %vm2413_vm3, %v2412_v48, %v2366_v47 }
 0x2e8   : > { %2954 = vrot.lane.b32.xlu0 %v4759_v23, %s3834_s14  ;;  %2956 = vrot.lane.b32.xlu1 %v4756_v22, %s3834_s14  ;;  %v2528_v46 = vmul.f32 %v2451_v29, %v2445_v50  ;;  %v2543_v4 = vmul.f32 %v2511_v56, %v2428_v33 }
 0x2ea   : > { %v2587_v59 = vpop.permute.xlu0 %2586  ;;  %v2410_v43 = vpop.permute.xlu1 %2409  ;;  %v2544_v6 = vadd.f32 %v2528_v46, %v4485_v13  ;;  %v2559_v13 = vadd.f32 %v2543_v4, %v4565_v40 }
 0x2eb   : > { %v2605_v61 = vsel %vm2592_vm2, %v2585_v17, %v2587_v59  ;;  %v2427_v34 = vsel %vm2413_vm3, %v2410_v43, %v2412_v48  ;;  %v2426_v7 = vsel %vm2413_vm3, %v2408_v21, %v2410_v43 }
 0x2ec   : > { %v2720_v5 = vmul.f32 %v2679_v58, %v2605_v61  ;;  %2958 = vrot.lane.b32.xlu0 %v4782_v60, %s3834_s14  ;;  %2781 = vrot.lane.b32.xlu1 %v4782_v60, %s3833_s4  ;;  %v2542_v17 = vmul.f32 %v2507_v62, %v2427_v34  ;;  %v2541_v24 = vmul.f32 %v2503_v49, %v2426_v7  ;;  %v4863_v58 = vld [vmem:[%s5186_s8 + $0x3] ss:$4 sm:$0xff] }
 0x2ed   : > { %v3015_v43 = vrot.slane %v4863_v58, %v4589_v45  ;;  %v3019_v4 = vrot.slane %v4863_v58, %v4610_v55 }
 0x2ee   : > { %v2591_v53 = vpop.permute.xlu0 %2590  ;;  %v2589_v32 = vpop.permute.xlu1 %2588  ;;  %v4806_v31 = vadd.f32 %v2720_v5, %v2556_v1  ;;  %v2558_v28 = vadd.f32 %v2542_v17, %v4563_v39  ;;  %v2557_v40 = vadd.f32 %v2541_v24, %v4571_v41  ;;  %v4850_v41 = vld [vmem:[%s5186_s8 + $0x2] ss:$4 sm:$0xff] }
 0x2ef   : > { %v2625_v8 = vsel %vm2592_vm2, %v2591_v53, %v4581_v42  ;;  %v2607_v36 = vsel %vm2592_vm2, %v2589_v32, %v2591_v53  ;;  %v2606_v35 = vsel %vm2592_vm2, %v2587_v59, %v2589_v32  ;;  %v4819_v42 = vadd.f32 %v2708_v14, %v2544_v6 }
 0x2f0   : > { %v2723_v21 = vmul.f32 %v2691_v63, %v2625_v8  ;;  %2783 = vrot.lane.b32.xlu0 %v4806_v31, %s3833_s4  ;;  %2960 = vrot.lane.b32.xlu1 %v4806_v31, %s3834_s14  ;;  %v2722_v25 = vmul.f32 %v2687_v38, %v2607_v36  ;;  %v2721_v9 = vmul.f32 %v2683_v15, %v2606_v35 }
 0x2f1   : > { %v2835_v50 = vrot.slane %v4850_v41, %v4589_v45  ;;  %v2839_v46 = vrot.slane %v4850_v41, %v4610_v55  ;;  %v2843_v6 = vrot.slane %v4850_v41, %v4628_v10  ;;  %v2847_v32 = vrot.slane %v4850_v41, %v4642_v19 }
 0x2f2   : > { %v4821_v26 = vadd.f32 %v2723_v21, %v2559_v13  ;;  %v4829_v29 = vadd.f32 %v2722_v25, %v2558_v28  ;;  %v4831_v47 = vadd.f32 %v2721_v9, %v2557_v40  ;;  %v3023_v21 = vrot.slane %v4863_v58, %v4628_v10 }
 0x2f3   : > { %v3027_v35 = vrot.slane %v4863_v58, %v4642_v19 }
 0x2f4   : > { %2759 = vrot.lane.b32.xlu0 %v4819_v42, %s3833_s4  ;;  %2741 = vrot.lane.b32.xlu1 %v4821_v26, %s3833_s4 }
 0x2f8   : > { %2787 = vrot.lane.b32.xlu0 %v4829_v29, %s3833_s4  ;;  %2785 = vrot.lane.b32.xlu1 %v4831_v47, %s3833_s4  ;;  %s3397_s4 = sshll.u32 %s5184_s17, 4 }
 0x2fc   : > { %2962 = vrot.lane.b32.xlu0 %v4831_v47, %s3834_s14  ;;  %2936 = vrot.lane.b32.xlu1 %v4819_v42, %s3834_s14 }
 0x300   : > { %2966 = vrot.lane.b32.xlu0 %v4821_v26, %s3834_s14  ;;  %2964 = vrot.lane.b32.xlu1 %v4829_v29, %s3834_s14  ;;  %s3398_s14 = sshll.u32 %s5187_s26, 5 }
 0x301   : > { %s3145_s17 = sadd.s32 %s3398_s14, %s3397_s4 }
 0x302   : > { %s3399_s30 = sshll.u32 %s3145_s17, 7 }
 0x303   : > { %s5011_s22 = scalar_lea.hbm %s5189_s7, %s3399_s30 }
 0x334   : > { %v4845_v39 = vpop.permute.xlu1 %2761 }
 0x336   : > { %v2764_v48 = vpop.permute.xlu0 %2763 }
 0x337   : > { %v2791_v52 = vsel %vm2789_vm4, %v4845_v39, %v2764_v48 }
 0x338   : > { %v4854_v51 = vpop.permute.xlu1 %2940  ;;  %v2906_v33 = vmul.f32 %v2835_v50, %v2791_v52  ;;  %v3031_v50 = vrot.slane %v4863_v58, %v4645_v20 }
 0x33a   : > { %v4858_v56 = vpop.permute.xlu0 %2938  ;;  %v2922_v63 = vadd.f32 %v2906_v33, %v4634_v3 }
 0x33c   : > { %v2766_v59 = vpop.permute.xlu1 %2765 }
 0x33d   : > { %v2792_v37 = vsel %vm2789_vm4, %v2764_v48, %v2766_v59 }
 0x33e   : > { %v2943_v61 = vpop.permute.xlu0 %2942  ;;  %v2907_v0 = vmul.f32 %v2839_v46, %v2792_v37 }
 0x33f   : > { %v2971_v62 = vsel %vm2968_vm5, %v4854_v51, %v2943_v61 }
 0x340   : > { %v3086_v1 = vmul.f32 %v3015_v43, %v2971_v62  ;;  %v2923_v53 = vadd.f32 %v2907_v0, %v4659_v27  ;;  %v2851_v27 = vrot.slane %v4850_v41, %v4645_v20  ;;  %v2855_v43 = vrot.slane %v4850_v41, %v4671_v57 }
 0x342   : > { %v3102_v5 = vadd.f32 %v3086_v1, %v2922_v63  ;;  %v2768_v49 = vpop.permute.xlu0 %2767  ;;  %v2945_v34 = vpop.permute.xlu1 %2944 }
 0x343   : > { %v2972_v7 = vsel %vm2968_vm5, %v2943_v61, %v2945_v34  ;;  %v2793_v3 = vsel %vm2789_vm4, %v2766_v59, %v2768_v49 }
 0x344   : > { %3118 = vst [vmem:[%s4880_s23 + $0x10] sm:$0xff] %v3102_v5  ;;  %v3087_v38 = vmul.f32 %v3019_v4, %v2972_v7  ;;  %v2908_v36 = vmul.f32 %v2843_v6, %v2793_v3  ;;  %v4911_v5 = vld [vmem:[%s5186_s8 + $0x22] ss:$4 sm:$0xff] }
 0x346   : > { %v3103_v14 = vadd.f32 %v3087_v38, %v2923_v53  ;;  %v2772_v8 = vpop.permute.xlu0 %2771  ;;  %v2770_v15 = vpop.permute.xlu1 %2769  ;;  %v2924_v28 = vadd.f32 %v2908_v36, %v4678_v2 }
 0x347   : > { %v2794_v13 = vsel %vm2789_vm4, %v2768_v49, %v2770_v15  ;;  %v2795_v24 = vsel %vm2789_vm4, %v2770_v15, %v2772_v8  ;;  %v3035_v49 = vrot.slane %v4863_v58, %v4671_v57 }
 0x348   : > { %3119 = vst [vmem:[%s4880_s23 + $0x18] sm:$0xff] %v3103_v14  ;;  %v2909_v17 = vmul.f32 %v2847_v32, %v2794_v13  ;;  %v2910_v52 = vmul.f32 %v2851_v27, %v2795_v24  ;;  %v2863_v14 = vrot.slane %v4911_v5, %v4586_v44 }
 0x34a   : > { %v2947_v25 = vpop.permute.xlu0 %2946  ;;  %v2949_v9 = vpop.permute.xlu1 %2948  ;;  %v2925_v33 = vadd.f32 %v2909_v17, %v4701_v18  ;;  %v2926_v0 = vadd.f32 %v2910_v52, %v4699_v16  ;;  %v2859_v16 = vrot.slane %v4911_v5, %v4695_v12  ;;  %v2867_v17 = vrot.slane %v4911_v5, %v4589_v45 }
 0x34b   : > { %v2973_v40 = vsel %vm2968_vm5, %v2945_v34, %v2947_v25  ;;  %v2974_v48 = vsel %vm2968_vm5, %v2947_v25, %v2949_v9 }
 0x34c   : > { %v3088_v46 = vmul.f32 %v3023_v21, %v2973_v40  ;;  %v3089_v59 = vmul.f32 %v3027_v35, %v2974_v48 }
 0x34e   : > { %v3104_v37 = vadd.f32 %v3088_v46, %v2924_v28  ;;  %v3105_v61 = vadd.f32 %v3089_v59, %v2925_v33  ;;  %v2951_v2 = vpop.permute.xlu0 %2950  ;;  %v2774_v63 = vpop.permute.xlu1 %2773 }
 0x34f   : > { %v2975_v62 = vsel %vm2968_vm5, %v2949_v9, %v2951_v2  ;;  %v2796_v4 = vsel %vm2789_vm4, %v2772_v8, %v2774_v63  ;;  %v4926_v8 = vld [vmem:[%s5186_s8 + $0x23] ss:$4 sm:$0xff] }
 0x350   : > { %3120 = vst [vmem:[%s4880_s23 + $0x20] sm:$0xff] %v3104_v37  ;;  %3121 = vst [vmem:[%s4880_s23 + $0x28] sm:$0xff] %v3105_v61  ;;  %v3090_v1 = vmul.f32 %v3031_v50, %v2975_v62  ;;  %v2911_v18 = vmul.f32 %v2855_v43, %v2796_v4  ;;  %v3039_v21 = vrot.slane %v4926_v8, %v4695_v12 }
 0x351   : > { %v3043_v25 = vrot.slane %v4926_v8, %v4586_v44  ;;  %v3047_v48 = vrot.slane %v4926_v8, %v4589_v45  ;;  %v2871_v37 = vrot.slane %v4911_v5, %v4610_v55 }
 0x352   : > { %v3106_v34 = vadd.f32 %v3090_v1, %v2926_v0  ;;  %v2776_v6 = vpop.permute.xlu0 %2775  ;;  %v2953_v7 = vpop.permute.xlu1 %2952  ;;  %v2927_v3 = vadd.f32 %v2911_v18, %v4727_v54 }
 0x353   : > { %v2976_v53 = vsel %vm2968_vm5, %v2951_v2, %v2953_v7  ;;  %v2797_v38 = vsel %vm2789_vm4, %v2774_v63, %v2776_v6 }
 0x354   : > { %3122 = vst [vmem:[%s4880_s23 + $0x30] sm:$0xff] %v3106_v34  ;;  %v3091_v32 = vmul.f32 %v3035_v49, %v2976_v53  ;;  %v2912_v27 = vmul.f32 %v2859_v16, %v2797_v38  ;;  %v3011_v53 = vrot.slane %v4863_v58, %v4586_v44 }
 0x356   : > { %v2780_v15 = vpop.permute.xlu0 %2779  ;;  %v3107_v36 = vadd.f32 %v3091_v32, %v2927_v3  ;;  %v2778_v13 = vpop.permute.xlu1 %2777  ;;  %v2928_v50 = vadd.f32 %v2912_v27, %v4742_v30 }
 0x357   : > { %v2798_v54 = vsel %vm2789_vm4, %v2776_v6, %v2778_v13  ;;  %v2799_v35 = vsel %vm2789_vm4, %v2778_v13, %v2780_v15 }
 0x358   : > { %3123 = vst [vmem:[%s4880_s23 + $0x38] sm:$0xff] %v3107_v36  ;;  %v2913_v24 = vmul.f32 %v2863_v14, %v2798_v54  ;;  %v2914_v52 = vmul.f32 %v2867_v17, %v2799_v35 }
 0x35a   : > { %v2955_v9 = vpop.permute.xlu0 %2954  ;;  %v2957_v40 = vpop.permute.xlu1 %2956  ;;  %v2929_v59 = vadd.f32 %v2913_v24, %v4759_v23  ;;  %v2930_v30 = vadd.f32 %v2914_v52, %v4756_v22  ;;  %v3051_v23 = vrot.slane %v4926_v8, %v4610_v55  ;;  %v2970_v55 = vsel %vm2968_vm5, %v4858_v56, %v4854_v51 }
 0x35b   : > { %v2977_v28 = vsel %vm2968_vm5, %v2953_v7, %v2955_v9  ;;  %v2978_v46 = vsel %vm2968_vm5, %v2955_v9, %v2957_v40  ;;  %v2831_v7 = vrot.slane %v4850_v41, %v4586_v44  ;;  %v2827_v44 = vrot.slane %v4850_v41, %v4695_v12 }
 0x35c   : > { %v3092_v33 = vmul.f32 %v3039_v21, %v2977_v28  ;;  %v3093_v43 = vmul.f32 %v3043_v25, %v2978_v46  ;;  %v3085_v13 = vmul.f32 %v3011_v53, %v2970_v55  ;;  %v2879_v24 = vrot.slane %v4911_v5, %v4642_v19 }
 0x35d   : > { %v3055_v41 = vrot.slane %v4926_v8, %v4628_v10  ;;  %v2883_v9 = vrot.slane %v4911_v5, %v4645_v20  ;;  %v3007_v28 = vrot.slane %v4863_v58, %v4695_v12  ;;  %v3063_v12 = vrot.slane %v4926_v8, %v4645_v20 }
 0x35e   : > { %v3108_v61 = vadd.f32 %v3092_v33, %v2928_v50  ;;  %v2959_v2 = vpop.permute.xlu0 %2958  ;;  %v3109_v62 = vadd.f32 %v3093_v43, %v2929_v59  ;;  %v2782_v45 = vpop.permute.xlu1 %2781  ;;  %v3067_v33 = vrot.slane %v4926_v8, %v4671_v57 }
 0x35f   : > { %v2979_v63 = vsel %vm2968_vm5, %v2957_v40, %v2959_v2  ;;  %v2800_v1 = vsel %vm2789_vm4, %v2780_v15, %v2782_v45  ;;  %v2875_v15 = vrot.slane %v4911_v5, %v4628_v10 }
 0x360   : > { %3124 = vst [vmem:[%s4880_s23 + $0x40] sm:$0xff] %v3108_v61  ;;  %v3094_v0 = vmul.f32 %v3047_v48, %v2979_v63  ;;  %3125 = vst [vmem:[%s4880_s23 + $0x48] sm:$0xff] %v3109_v62  ;;  %v2915_v4 = vmul.f32 %v2871_v37, %v2800_v1 }
 0x362   : > { %v3110_v18 = vadd.f32 %v3094_v0, %v2930_v30  ;;  %v2784_v49 = vpop.permute.xlu0 %2783  ;;  %v2961_v34 = vpop.permute.xlu1 %2960  ;;  %v2931_v22 = vadd.f32 %v2915_v4, %v4782_v60 }
 0x363   : > { %v2980_v6 = vsel %vm2968_vm5, %v2959_v2, %v2961_v34  ;;  %v2801_v60 = vsel %vm2789_vm4, %v2782_v45, %v2784_v49 }
 0x364   : > { %3126 = vst [vmem:[%s4880_s23 + $0x50] sm:$0xff] %v3110_v18  ;;  %v3095_v16 = vmul.f32 %v3051_v23, %v2980_v6  ;;  %v2916_v21 = vmul.f32 %v2875_v15, %v2801_v60 }
 0x366   : > { %v2760_v3 = vpop.permute.xlu0 %2759  ;;  %v3111_v38 = vadd.f32 %v3095_v16, %v2931_v22  ;;  %v2742_v14 = vpop.permute.xlu1 %2741  ;;  %v2932_v58 = vadd.f32 %v2916_v21, %v4806_v31 }
 0x367   : > { %v2790_v32 = vsel %vm2789_vm4, %v2760_v3, %v4845_v39  ;;  %v2821_v51 = vsel %vm2789_vm4, %v2742_v14, %v2760_v3  ;;  %v2887_v39 = vrot.slane %v4911_v5, %v4671_v57  ;;  %v3059_v5 = vrot.slane %v4926_v8, %v4642_v19 }
 0x368   : > { %v2905_v36 = vmul.f32 %v2831_v7, %v2790_v32  ;;  %3127 = vst [vmem:[%s4880_s23 + $0x58] sm:$0xff] %v3111_v38  ;;  %v2904_v25 = vmul.f32 %v2827_v44, %v2821_v51 }
 0x36a   : > { %v2921_v27 = vadd.f32 %v2905_v36, %v4630_v11  ;;  %v2788_v17 = vpop.permute.xlu0 %2787  ;;  %v2786_v54 = vpop.permute.xlu1 %2785  ;;  %v2920_v37 = vadd.f32 %v2904_v25, %v4819_v42 }
 0x36b   : > { %v2804_v11 = vsel %vm2789_vm4, %v2788_v17, %v2742_v14  ;;  %v2802_v40 = vsel %vm2789_vm4, %v2784_v49, %v2786_v54  ;;  %v2803_v48 = vsel %vm2789_vm4, %v2786_v54, %v2788_v17 }
 0x36c   : > { %v3101_v35 = vadd.f32 %v3085_v13, %v2921_v27  ;;  %v2919_v46 = vmul.f32 %v2887_v39, %v2804_v11  ;;  %v2917_v61 = vmul.f32 %v2879_v24, %v2802_v40  ;;  %v2918_v2 = vmul.f32 %v2883_v9, %v2803_v48 }
 0x36e   : > { %3117 = vst [vmem:[%s4880_s23 + $0x8] sm:$0xff] %v3101_v35  ;;  %v2963_v50 = vpop.permute.xlu0 %2962  ;;  %v2937_v10 = vpop.permute.xlu1 %2936  ;;  %v2935_v31 = vadd.f32 %v2919_v46, %v4821_v26  ;;  %v2933_v30 = vadd.f32 %v2917_v61, %v4831_v47  ;;  %v2934_v0 = vadd.f32 %v2918_v2, %v4829_v29 }
 0x36f   : > { %v2981_v52 = vsel %vm2968_vm5, %v2961_v34, %v2963_v50  ;;  %v2969_v43 = vsel %vm2968_vm5, %v2937_v10, %v4858_v56 }
 0x370   : > { %v3096_v59 = vmul.f32 %v3055_v41, %v2981_v52  ;;  %v3084_v57 = vmul.f32 %v3007_v28, %v2969_v43 }
 0x372   : > { %v3112_v19 = vadd.f32 %v3096_v59, %v2932_v58  ;;  %v2967_v62 = vpop.permute.xlu0 %2966  ;;  %v3100_v63 = vadd.f32 %v3084_v57, %v2920_v37  ;;  %v2965_v8 = vpop.permute.xlu1 %2964 }
 0x373   : > { %v3001_v20 = vsel %vm2968_vm5, %v2967_v62, %v2937_v10  ;;  %v2982_v42 = vsel %vm2968_vm5, %v2963_v50, %v2965_v8  ;;  %v2983_v56 = vsel %vm2968_vm5, %v2965_v8, %v2967_v62 }
 0x374   : > { %3128 = vst [vmem:[%s4880_s23 + $0x60] sm:$0xff] %v3112_v19  ;;  %v3099_v45 = vmul.f32 %v3067_v33, %v3001_v20  ;;  %3116 = vst [vmem:[%s4880_s23] sm:$0xff] %v3100_v63  ;;  %v3097_v1 = vmul.f32 %v3059_v5, %v2982_v42  ;;  %v3098_v26 = vmul.f32 %v3063_v12, %v2983_v56 }
 0x376   : > { %v3115_v4 = vadd.f32 %v3099_v45, %v2935_v31  ;;  %v3113_v23 = vadd.f32 %v3097_v1, %v2933_v30  ;;  %v3114_v18 = vadd.f32 %v3098_v26, %v2934_v0 }
 0x378   : > { %3131 = vst [vmem:[%s4880_s23 + $0x78] sm:$0xff] %v3115_v4  ;;  %3129 = vst [vmem:[%s4880_s23 + $0x68] sm:$0xff] %v3113_v23 }
 0x379   : > { %3130 = vst [vmem:[%s4880_s23 + $0x70] sm:$0xff] %v3114_v18 }
 0x37a   : > { %3682 = shalt.err (!%p3679_p13)
}
 0x37b   : > { %s3683_s15 = scalar_lea.hbm %s5011_s22, 2048  ;;  %s3687_s26 = scalar_lea.hbm %s5189_s7, 8192 }
 0x37c   : > { %p3684_p7 = scmp.ne.s32.totalorder %s5011_s22, %s3683_s15  ;;  %p3688_p5 = scmp.lt.u32.totalorder %s5011_s22, %s5189_s7 }
 0x37d   : > { %p3689_p2 = scmp.lt.u32.totalorder %s3687_s26, %s3683_s15  ;;  %p3691_p11 = scmp.lt.u32.totalorder %s3683_s15, %s5011_s22 }
 0x37e   : > { %p3685_p3 = pnand %p3684_p7, %p5190_p12 }
 0x37f   : > { %p3690_p1 = por %p3689_p2, %p3688_p5 }
 0x380   : > { %p3686_p10 = pneg %p3685_p3 }
 0x381   : > { %p3692_p4 = por %p3691_p11, %p3690_p1 }
 0x383   : > { %p3693_p0 = pnand %p3692_p4, %p3686_p10 }
 0x385   : > { %3696 = shalt.err (!%p3693_p0)
}
 0x386   : > { %3440 = dma.vmem_to_hbm [thread:$0]  (%p5190_p12), %s5013_s3, 2048, %s5011_s22, %s3133_s16  }
 0x387 PF: > { %s5191_s17 = sld [smem:[#allocation13_spill]]  ;;  %s5192_s30 = sld [smem:[#allocation23_spill]] }
 0x388   : > { %p3457_p6 = scmp.ge.s32.totalorder %s3823_s18, 2 }
 0x38d   : > { %s3161_s5 = sand.u32 1, %s5191_s17   ;;  %p5193_p8 = scmp.ne.s32.totalorder %s5192_s30, 0 }
 0x38e   : > { %s3162_s25 = scalar_lea.sflag [#allocation4], %s3161_s5 }
 0x38f   : > { %p3453_p9 = pnand %p3457_p6, %p5193_p8 }
 0x391   : > { %3766 = dma.done.wait (!%p3453_p9), %s3162_s25, 2048  }
 0x392   : > { %3768 = vsyncadd (!%p3453_p9), %s3162_s25, 4294965248  ;;  %s27_s18 = sadd.s32 1, %s3823_s18   ;;  %s5195_s30 = sld [smem:[#allocation14_spill]] }
 0x393   : > { %p5045_p13 = scmp.ge.s32.totalorder %s27_s18, 6   ;;  %s5196_s3 = sld [smem:[#allocation15_spill]] }
 0x394   : > { %s5197_s20 = smov %s4088_s11  ;;  %s5198_s14 = sld [smem:[#allocation18_spill]] }
 0x395   : > { %s5199_s15 = sld [smem:[#allocation19_spill]]  ;;  %s5200_s16 = sld [smem:[#allocation20_spill]] }
 0x396   : > { %s5201_s17 = sld [smem:[#allocation25_spill]]  ;;  %s5203_s27 = smov %s3775_s28 }
 0x397   : > { %s5204_s28 = smov %s3779_s29  ;;  %s5205_s29 = smov %s4167_s21 }
 0x398   : > { %s5206_s9 = smov %s3791_s10  ;;  %s5207_s10 = smov %s4097_s24 }
 0x399   : > { %s5208_s11 = smov %s5196_s3  ;;  %s5209_s12 = smov %s3803_s13 }
 0x39a   : > { %s5210_s13 = smov %s5197_s20  ;;  %26 = sbr.rel (!%p5045_p13) target bundleno = 20 (0x14), region = 130 }
 0x3a1   :  { %3167 = vsyncpa [#allocation3], 1 }
 0x3a2   :  { %3169 = vsyncpa [#allocation3 + $0x1], 1 }
 0x3a3   :  { %3170 = vsyncpa [#allocation6], 1 }
 0x3a4   :  { %3172 = vsyncpa [#allocation6 + $0x1], 1 }
 0x3a5   :  { %3173 = vsyncpa [#allocation4], 1 }
 0x3a6   :  { %3175 = vsyncpa [#allocation4 + $0x1], 1 }

</bundles_post_ra>
